<compile_context>
chip_gen: v7x
topology: tpu7x:2x2x1
jax: 0.10.0
libtpu: 0.0.40
codegen_flags: <defaults>
</compile_context>

<pallas_src>
import functools
import math

import jax
import jax.numpy as jnp
from jax.experimental import pallas as pl
from jax.experimental.pallas import tpu as pltpu

_INV_SQRT2 = 1.0 / math.sqrt(2.0)


# ----------------------------- in-kernel helpers ----------------------------

def _erf_approx(x):
    """erf via Abramowitz–Stegun 7.1.26 (|err| < 1.5e-7): exp on the EUP slot
    plus a short polynomial, avoids relying on a lax.erf lowering."""
    a1, a2, a3, a4, a5 = (0.254829592, -0.284496736, 1.421413741,
                          -1.453152027, 1.061405429)
    p = 0.3275911
    ax = jnp.abs(x)
    t = 1.0 / (1.0 + p * ax)
    poly = ((((a5 * t + a4) * t + a3) * t + a2) * t + a1) * t
    y = 1.0 - poly * jnp.exp(-(ax * ax))
    return jnp.where(x < 0.0, -y, y)


def _conv3x3_rows(xpad, w_dy, n_rows, W):
    """3x3 'valid' conv over an already padded row block, as 3 matmuls.

    xpad : (n_rows + 2, W + 2, C) value; 1-col pad each side, 1-row halo each side.
    w_dy : (3, 3*C, Cout) bf16 weight; w_dy[dy] rows ordered (dx, c).
    Returns (n_rows * W, Cout) float32 (no bias).
    """
    C = xpad.shape[-1]
    # only the 3 dx-shifted copies are materialised, concatenated once on lanes
    xcat = jnp.concatenate(
        [xpad[:, 0:W, :], xpad[:, 1:W + 1, :], xpad[:, 2:W + 2, :]],
        axis=-1)                                            # (n_rows+2, W, 3C)
    acc = None
    for dy in range(3):                                     # static unroll
        op = xcat[dy:dy + n_rows].reshape(n_rows * W, 3 * C).astype(jnp.bfloat16)
        part = jnp.dot(op, w_dy[dy], preferred_element_type=jnp.float32)
        acc = part if acc is None else acc + part
    return acc


# -------------------------------- Pallas kernel ------------------------------

def _cans_fused_kernel(xs_ref, bbw_ref, bbb_ref, hw_ref, hb_ref, w2_ref, b2_ref,
                       out_ref, *, T, W, Cin, Cw, Craw, Crgb):
    # xs_ref : (1, 1, T+4, W+2, Cin) bf16  -- row tile with 2-row halo each side,
    #                                        already reflect-padded by 1 in W.
    # bbw_ref: (3, 3*Cin, Cw) bf16, bbb_ref: (1, Cw) f32     backbone conv3x3
    # hw_ref : (3, 3*Cw, Cw+Craw) bf16, hb_ref: (1, Cw+Craw) merged rgb1 ++ raw
    # w2_ref : (Cw, Crgb) bf16, b2_ref: (1, Crgb)            rgb 1x1
    # out_ref: (1, T, W, Crgb+Craw)                          fused [rgb | raw]
    Cout = Crgb + Craw
    t = pl.program_id(1)
    n_t = pl.num_programs(1)

    xs = xs_ref[0, 0]                                        # (T+4, W+2, Cin)

    # ---- backbone stand-in conv3x3: T+2 fea rows (incl. 1-row halo each side)
    fea = _conv3x3_rows(xs, bbw_ref[...], T + 2, W) + bbb_ref[...]
    fea = fea.reshape(T + 2, W, Cw)                          # f32

    # ---- fea halo rows: real neighbour rows for interior tiles, reflection at
    #      the true image borders (fea[-1] := fea[1], fea[H] := fea[H-2]).
    is_first = (t == 0).astype(jnp.float32)
    is_last = (t == n_t - 1).astype(jnp.float32)
    top = is_first * fea[2] + (1.0 - is_first) * fea[0]
    bot = is_last * fea[T - 1] + (1.0 - is_last) * fea[T + 1]
    fea_h = jnp.concatenate([top[None], fea[1:T + 1], bot[None]], axis=0)
    # reflect pad in W (both head convs use padding_mode='reflect')
    fea_p = jnp.concatenate([fea_h[:, 1:2], fea_h, fea_h[:, W - 2:W - 1]],
                            axis=1).astype(jnp.bfloat16)     # (T+2, W+2, Cw)

    # ---- merged RGB-conv1 ++ RAW-head conv3x3
    acc = _conv3x3_rows(fea_p, hw_ref[...], T, W) + hb_ref[...]   # (T*W, Cw+Craw)
    h = acc[:, :Cw]
    raw = acc[:, Cw:Cw + Craw]

    # exact GELU (torch.nn.GELU default): 0.5*x*(1+erf(x/sqrt(2)))
    g = 0.5 * h * (1.0 + _erf_approx(h * _INV_SQRT2))
    rgb = jnp.dot(g.astype(jnp.bfloat16), w2_ref[...],
                  preferred_element_type=jnp.float32) + b2_ref[...]   # (T*W, Crgb)

    out = jnp.concatenate([rgb, raw], axis=-1)                        # (T*W, Cout)
    out_ref[...] = out.reshape(1, T, W, Cout).astype(out_ref.dtype)


# ------------------------------- JAX wrappers --------------------------------

def _vmem_budget_bytes():
    cap = 64 * 1024 * 1024               # conservative default (v7x per-TC VMEM)
    try:
        info = pltpu.get_tpu_info()
        cap = int(getattr(info, "vmem_capacity_bytes", cap))
    except Exception:
        pass
    # ~48 MiB on v7x (64 MiB/TC), ~96 MiB on v5e/v6e (128 MiB)
    return max(32 << 20, min((cap * 3) // 4, 100 << 20))


def _choose_tile_rows(H, W, budget_bytes):
    """Pick a row-tile height: multiple of 8, divides H, fits the VMEM budget."""
    per_row = max(1, W) * 5 * 1024       # crude per-row transient estimate
    t = min(H, 256, max(8, budget_bytes // per_row))
    if t >= H and H >= 16:               # ensure >=2 grid steps (pipelining, v7x)
        t = H // 2
    t = max(8, (t // 8) * 8)
    while H % t:
        t -= 8
    return t


def cans_fused_pallas(xslab, bbw, bbb, hw, hb, w2, b2, *, T, W, vmem_limit):
    """Fused backbone + RAW head + RGB head. Returns (N, H, W, Crgb+Craw)."""
    N, nT, Rt, Wc, Cin = xslab.shape     # Rt = T+4, Wc = W+2
    Cw = bbw.shape[-1]
    Ch = hw.shape[-1]
    Crgb = w2.shape[-1]
    Craw = Ch - Cw
    Cout = Crgb + Craw
    H = nT * T

    kern = functools.partial(_cans_fused_kernel, T=T, W=W, Cin=Cin, Cw=Cw,
                             Craw=Craw, Crgb=Crgb)
    return pl.pallas_call(
        kern,
        out_shape=jax.ShapeDtypeStruct((N, H, W, Cout), jnp.float32),
        grid_spec=pltpu.PrefetchScalarGridSpec(
            num_scalar_prefetch=0,
            grid=(N, nT),
            in_specs=[
                pl.BlockSpec((1, 1, Rt, Wc, Cin), lambda n, t: (n, t, 0, 0, 0)),
                pl.BlockSpec(bbw.shape, lambda n, t: (0, 0, 0)),
                pl.BlockSpec(bbb.shape, lambda n, t: (0, 0)),
                pl.BlockSpec(hw.shape, lambda n, t: (0, 0, 0)),
                pl.BlockSpec(hb.shape, lambda n, t: (0, 0)),
                pl.BlockSpec(w2.shape, lambda n, t: (0, 0)),
                pl.BlockSpec(b2.shape, lambda n, t: (0, 0)),
            ],
            out_specs=pl.BlockSpec((1, T, W, Cout), lambda n, t: (n, t, 0, 0)),
        ),
        compiler_params=pltpu.CompilerParams(
            dimension_semantics=("parallel", "parallel"),
            vmem_limit_bytes=int(vmem_limit),
        ),
    )(xslab, bbw, bbb, hw, hb, w2, b2)


def pixel_shuffle_nhwc(x, r):
    # torch.nn.PixelShuffle: in channel c*r*r + i*r + j -> out (c, h*r+i, w*r+j)
    N, H, W, C = x.shape
    c = C // (r * r)
    x = x.reshape(N, H, W, c, r, r)
    x = jnp.transpose(x, (0, 1, 4, 2, 5, 3))
    return x.reshape(N, H * r, W * r, c)


def init_params(key, in_channel=4, width=32, block_size=2):
    # Conv weights stored as (kH, kW, Cin, Cout).
    # NOTE: real torch Conv2d weights are (Cout, Cin, kH, kW) -> permute (2,3,1,0).
    # TODO(synk): stand-in backbone weights (true Backbone definition unavailable).
    ks = jax.random.split(key, 8)
    s = 0.05
    return dict(
        bb_w=s * jax.random.normal(ks[0], (3, 3, in_channel, width), jnp.float32),
        bb_b=s * jax.random.normal(ks[1], (width,), jnp.float32),
        raw_w=s * jax.random.normal(ks[2], (3, 3, width, block_size ** 2), jnp.float32),
        raw_b=s * jax.random.normal(ks[3], (block_size ** 2,), jnp.float32),
        rgb_w1=s * jax.random.normal(ks[4], (3, 3, width, width), jnp.float32),
        rgb_b1=s * jax.random.normal(ks[5], (width,), jnp.float32),
        rgb_w2=s * jax.random.normal(ks[6], (width, 3 * block_size ** 2), jnp.float32),
        rgb_b2=s * jax.random.normal(ks[7], (3 * block_size ** 2,), jnp.float32),
    )


@functools.partial(jax.jit, static_argnames=("block_size",))
def cans_forward(x_nchw, params, block_size=2):
    """CANS.forward.  x_nchw: (N, in_channel, H, W)  ->  (rgb NCHW, raw NCHW)."""
    N, Cin, H0, W0 = x_nchw.shape

    # _check_and_padding: reflect pad H, W to multiples of 2**(4-1) = 8
    stride = 2 ** (4 - 1)
    dh = (-H0) % stride
    dw = (-W0) % stride
    top, bottom = dh // 2, dh - dh // 2
    left, right = dw // 2, dw - dw // 2

    x = jnp.transpose(x_nchw, (0, 2, 3, 1)).astype(jnp.float32)   # NCHW -> NHWC
    if dh or dw:
        x = jnp.pad(x, ((0, 0), (top, bottom), (left, right), (0, 0)), mode="reflect")
    H, W = H0 + dh, W0 + dw

    width = params["rgb_w1"].shape[-1]
    Craw = params["raw_w"].shape[-1]
    Crgb = params["rgb_w2"].shape[-1]
    Cout = Crgb + Craw

    budget = _vmem_budget_bytes()
    T = _choose_tile_rows(H, W, budget)
    nT = H // T

    # backbone's 1-px reflect halo applied once in HBM, plus one edge row
    # top/bottom so every H-tile reads a uniform (T+4)-row window.
    xp = jnp.pad(x, ((0, 0), (1, 1), (1, 1), (0, 0)), mode="reflect")   # (N,H+2,W+2,C)
    xpp = jnp.pad(xp, ((0, 0), (1, 1), (0, 0), (0, 0)), mode="edge")    # (N,H+4,W+2,C)
    xslab = jnp.stack([xpp[:, i * T:i * T + T + 4] for i in range(nT)], axis=1)
    xslab = xslab.astype(jnp.bfloat16)                    # (N, nT, T+4, W+2, Cin)

    # weight re-layout: per-dy tap-stacked matmuls, merged head conv, bf16 operands
    bbw = params["bb_w"].reshape(3, 3 * Cin, width).astype(jnp.bfloat16)
    bbb = params["bb_b"].reshape(1, width).astype(jnp.float32)
    hw = jnp.concatenate([params["rgb_w1"], params["raw_w"]], axis=-1)
    hw = hw.reshape(3, 3 * width, width + Craw).astype(jnp.bfloat16)
    hb = jnp.concatenate([params["rgb_b1"], params["raw_b"]],
                         axis=-1).reshape(1, -1).astype(jnp.float32)
    w2 = params["rgb_w2"].astype(jnp.bfloat16)
    b2 = params["rgb_b2"].reshape(1, Crgb).astype(jnp.float32)

    out = cans_fused_pallas(xslab, bbw, bbb, hw, hb, w2, b2,
                            T=T, W=W, vmem_limit=budget)   # (N, H, W, Cout)

    rgb12 = out[..., :Crgb]
    raw = out[..., Crgb:]
    rgb = pixel_shuffle_nhwc(rgb12, block_size)

    # _check_and_crop
    bs = block_size
    rgb = rgb[:, top * bs:(H0 + top) * bs, left * bs:(W0 + left) * bs, :]
    raw = raw[:, top:H0 + top, left:W0 + left, :]
    return jnp.transpose(rgb, (0, 3, 1, 2)), jnp.transpose(raw, (0, 3, 1, 2))


# ------------------------- pure-JAX reference (f32) --------------------------

def _ref_conv3x3_reflect(x, w, b):
    H, W = x.shape[1], x.shape[2]
    xp = jnp.pad(x, ((0, 0), (1, 1), (1, 1), (0, 0)), mode="reflect")
    out = None
    for dy in range(3):
        for dx in range(3):
            part = jnp.einsum("nhwc,co->nhwo",
                              xp[:, dy:dy + H, dx:dx + W, :], w[dy, dx])
            out = part if out is None else out + part
    return out + b


def cans_forward_reference(x_nchw, params, block_size=2):
    N, Cin, H0, W0 = x_nchw.shape
    stride = 8
    dh, dw = (-H0) % stride, (-W0) % stride
    top, bottom = dh // 2, dh - dh // 2
    left, right = dw // 2, dw - dw // 2
    x = jnp.transpose(x_nchw, (0, 2, 3, 1)).astype(jnp.float32)
    if dh or dw:
        x = jnp.pad(x, ((0, 0), (top, bottom), (left, right), (0, 0)), mode="reflect")
    fea = _ref_conv3x3_reflect(x, params["bb_w"], params["bb_b"])
    raw = _ref_conv3x3_reflect(fea, params["raw_w"], params["raw_b"])
    h = _ref_conv3x3_reflect(fea, params["rgb_w1"], params["rgb_b1"])
    g = 0.5 * h * (1.0 + jax.lax.erf(h * _INV_SQRT2))
    rgb12 = jnp.einsum("nhwc,co->nhwo", g, params["rgb_w2"]) + params["rgb_b2"]
    rgb = pixel_shuffle_nhwc(rgb12, block_size)
    bs = block_size
    rgb = rgb[:, top * bs:(H0 + top) * bs, left * bs:(W0 + left) * bs, :]
    raw = raw[:, top:H0 + top, left:W0 + left, :]
    return jnp.transpose(rgb, (0, 3, 1, 2)), jnp.transpose(raw, (0, 3, 1, 2))


if __name__ == "__main__":
    key = jax.random.PRNGKey(0)
    kx, kp = jax.random.split(key)
    x = jax.random.normal(kx, (2, 4, 16, 16), jnp.float32)     # NCHW input
    params = init_params(kp, in_channel=4, width=32, block_size=2)

    rgb, raw = cans_forward(x, params, block_size=2)
    jax.block_until_ready((rgb, raw))

    assert rgb.shape == (2, 3, 32, 32), rgb.shape
    assert raw.shape == (2, 4, 16, 16), raw.shape
    assert bool(jnp.all(jnp.isfinite(rgb))) and bool(jnp.all(jnp.isfinite(raw)))

    rgb_ref, raw_ref = cans_forward_reference(x, params, block_size=2)
    assert bool(jnp.allclose(rgb, rgb_ref, atol=3e-2, rtol=3e-2)), \
        float(jnp.max(jnp.abs(rgb - rgb_ref)))
    assert bool(jnp.allclose(raw, raw_ref, atol=3e-2, rtol=3e-2)), \
        float(jnp.max(jnp.abs(raw - raw_ref)))
    print("KERNEL_OK")
</pallas_src>

<mosaic_0001>
module attributes {stable_mosaic.version = 11 : i64} {
  func.func @_cans_fused_kernel(%arg0: i32, %arg1: i32, %arg2: memref<1x1x12x18x4xbf16, #tpu.memory_space<vmem>>, %arg3: memref<3x12x32xbf16, #tpu.memory_space<vmem>>, %arg4: memref<1x32xf32, #tpu.memory_space<vmem>>, %arg5: memref<3x96x36xbf16, #tpu.memory_space<vmem>>, %arg6: memref<1x36xf32, #tpu.memory_space<vmem>>, %arg7: memref<32x12xbf16, #tpu.memory_space<vmem>>, %arg8: memref<1x12xf32, #tpu.memory_space<vmem>>, %arg9: memref<1x8x16x16xf32, #tpu.memory_space<vmem>>) attributes {dimension_semantics = [#tpu.dimension_semantics<parallel>, #tpu.dimension_semantics<parallel>], iteration_bounds = array<i64: 2, 2>, scalar_prefetch = 0 : i64, scratch_operands = 0 : i64, tpu.core_type = #tpu.core_type<tc>, window_params = [{transform_indices = @transform_0, window_bounds = array<i64: 1, 1, 12, 18, 4>}, {pipeline_mode = #tpu.pipeline_mode<synchronous>, transform_indices = @transform_1, window_bounds = array<i64: 3, 12, 32>}, {pipeline_mode = #tpu.pipeline_mode<synchronous>, transform_indices = @transform_2, window_bounds = array<i64: 1, 32>}, {pipeline_mode = #tpu.pipeline_mode<synchronous>, transform_indices = @transform_3, window_bounds = array<i64: 3, 96, 36>}, {pipeline_mode = #tpu.pipeline_mode<synchronous>, transform_indices = @transform_4, window_bounds = array<i64: 1, 36>}, {pipeline_mode = #tpu.pipeline_mode<synchronous>, transform_indices = @transform_5, window_bounds = array<i64: 32, 12>}, {pipeline_mode = #tpu.pipeline_mode<synchronous>, transform_indices = @transform_6, window_bounds = array<i64: 1, 12>}, {transform_indices = @transform_7, window_bounds = array<i64: 1, 8, 16, 16>}]} {
    %c0 = arith.constant 0 : index
    %c0_0 = arith.constant 0 : index
    %c0_1 = arith.constant 0 : index
    %c0_2 = arith.constant 0 : index
    %c0_3 = arith.constant 0 : index
    %0 = vector.load %arg2[%c0, %c0_0, %c0_1, %c0_2, %c0_3] : memref<1x1x12x18x4xbf16, #tpu.memory_space<vmem>>, vector<1x1x12x18x4xbf16>
    %1 = vector.shape_cast %0 : vector<1x1x12x18x4xbf16> to vector<12x18x4xbf16>
    %c0_4 = arith.constant 0 : index
    %c0_5 = arith.constant 0 : index
    %c0_6 = arith.constant 0 : index
    %2 = vector.load %arg3[%c0_4, %c0_5, %c0_6] : memref<3x12x32xbf16, #tpu.memory_space<vmem>>, vector<3x12x32xbf16>
    %3 = vector.extract_strided_slice %1 {offsets = [0, 0, 0], sizes = [12, 16, 4], strides = [1, 1, 1]} : vector<12x18x4xbf16> to vector<12x16x4xbf16>
    %4 = vector.extract_strided_slice %1 {offsets = [0, 1, 0], sizes = [12, 16, 4], strides = [1, 1, 1]} : vector<12x18x4xbf16> to vector<12x16x4xbf16>
    %5 = vector.extract_strided_slice %1 {offsets = [0, 2, 0], sizes = [12, 16, 4], strides = [1, 1, 1]} : vector<12x18x4xbf16> to vector<12x16x4xbf16>
    %6 = tpu.concatenate %3, %4, %5 in 2 : vector<12x16x4xbf16>, vector<12x16x4xbf16>, vector<12x16x4xbf16> -> vector<12x16x12xbf16>
    %7 = vector.extract_strided_slice %6 {offsets = [0, 0, 0], sizes = [10, 16, 12], strides = [1, 1, 1]} : vector<12x16x12xbf16> to vector<10x16x12xbf16>
    %8 = vector.shape_cast %7 : vector<10x16x12xbf16> to vector<160x12xbf16>
    %9 = vector.extract_strided_slice %2 {offsets = [0, 0, 0], sizes = [1, 12, 32], strides = [1, 1, 1]} : vector<3x12x32xbf16> to vector<1x12x32xbf16>
    %10 = vector.shape_cast %9 : vector<1x12x32xbf16> to vector<12x32xbf16>
    %cst = arith.constant dense<0.000000e+00> : vector<160x32xf32>
    %11 = tpu.matmul %8, %10, %cst {dimension_numbers = #tpu.dot_dimension_numbers<[1], [0], [0], [1], [0, 0, 1, 1], [], []>} : vector<160x12xbf16>, vector<12x32xbf16>, vector<160x32xf32> -> vector<160x32xf32>
    %12 = vector.extract_strided_slice %6 {offsets = [1, 0, 0], sizes = [10, 16, 12], strides = [1, 1, 1]} : vector<12x16x12xbf16> to vector<10x16x12xbf16>
    %13 = vector.shape_cast %12 : vector<10x16x12xbf16> to vector<160x12xbf16>
    %14 = vector.extract_strided_slice %2 {offsets = [1, 0, 0], sizes = [1, 12, 32], strides = [1, 1, 1]} : vector<3x12x32xbf16> to vector<1x12x32xbf16>
    %15 = vector.shape_cast %14 : vector<1x12x32xbf16> to vector<12x32xbf16>
    %cst_7 = arith.constant dense<0.000000e+00> : vector<160x32xf32>
    %16 = tpu.matmul %13, %15, %cst_7 {dimension_numbers = #tpu.dot_dimension_numbers<[1], [0], [0], [1], [0, 0, 1, 1], [], []>} : vector<160x12xbf16>, vector<12x32xbf16>, vector<160x32xf32> -> vector<160x32xf32>
    %17 = arith.addf %11, %16 : vector<160x32xf32>
    %18 = vector.extract_strided_slice %6 {offsets = [2, 0, 0], sizes = [10, 16, 12], strides = [1, 1, 1]} : vector<12x16x12xbf16> to vector<10x16x12xbf16>
    %19 = vector.shape_cast %18 : vector<10x16x12xbf16> to vector<160x12xbf16>
    %20 = vector.extract_strided_slice %2 {offsets = [2, 0, 0], sizes = [1, 12, 32], strides = [1, 1, 1]} : vector<3x12x32xbf16> to vector<1x12x32xbf16>
    %21 = vector.shape_cast %20 : vector<1x12x32xbf16> to vector<12x32xbf16>
    %cst_8 = arith.constant dense<0.000000e+00> : vector<160x32xf32>
    %22 = tpu.matmul %19, %21, %cst_8 {dimension_numbers = #tpu.dot_dimension_numbers<[1], [0], [0], [1], [0, 0, 1, 1], [], []>} : vector<160x12xbf16>, vector<12x32xbf16>, vector<160x32xf32> -> vector<160x32xf32>
    %23 = arith.addf %17, %22 : vector<160x32xf32>
    %c0_9 = arith.constant 0 : index
    %c0_10 = arith.constant 0 : index
    %24 = vector.load %arg4[%c0_9, %c0_10] : memref<1x32xf32, #tpu.memory_space<vmem>>, vector<1x32xf32>
    %25 = vector.broadcast %24 : vector<1x32xf32> to vector<160x32xf32>
    %26 = arith.addf %23, %25 : vector<160x32xf32>
    %27 = vector.shape_cast %26 : vector<160x32xf32> to vector<10x16x32xf32>
    %c0_i32 = arith.constant 0 : i32
    %28 = arith.cmpi eq, %arg1, %c0_i32 : i32
    %29 = arith.extui %28 : i1 to i32
    %30 = arith.sitofp %29 : i32 to f32
    %c1_i32 = arith.constant 1 : i32
    %31 = arith.cmpi eq, %arg1, %c1_i32 : i32
    %32 = arith.extui %31 : i1 to i32
    %33 = arith.sitofp %32 : i32 to f32
    %34 = vector.extract_strided_slice %27 {offsets = [2, 0, 0], sizes = [1, 16, 32], strides = [1, 1, 1]} : vector<10x16x32xf32> to vector<1x16x32xf32>
    %35 = vector.shape_cast %34 : vector<1x16x32xf32> to vector<16x32xf32>
    %36 = vector.broadcast %30 : f32 to vector<16x32xf32>
    %37 = arith.mulf %36, %35 : vector<16x32xf32>
    %cst_11 = arith.constant 1.000000e+00 : f32
    %38 = arith.subf %cst_11, %30 : f32
    %39 = vector.extract_strided_slice %27 {offsets = [0, 0, 0], sizes = [1, 16, 32], strides = [1, 1, 1]} : vector<10x16x32xf32> to vector<1x16x32xf32>
    %40 = vector.shape_cast %39 : vector<1x16x32xf32> to vector<16x32xf32>
    %41 = vector.broadcast %38 : f32 to vector<16x32xf32>
    %42 = arith.mulf %41, %40 : vector<16x32xf32>
    %43 = arith.addf %37, %42 : vector<16x32xf32>
    %44 = vector.extract_strided_slice %27 {offsets = [7, 0, 0], sizes = [1, 16, 32], strides = [1, 1, 1]} : vector<10x16x32xf32> to vector<1x16x32xf32>
    %45 = vector.shape_cast %44 : vector<1x16x32xf32> to vector<16x32xf32>
    %46 = vector.broadcast %33 : f32 to vector<16x32xf32>
    %47 = arith.mulf %46, %45 : vector<16x32xf32>
    %cst_12 = arith.constant 1.000000e+00 : f32
    %48 = arith.subf %cst_12, %33 : f32
    %49 = vector.extract_strided_slice %27 {offsets = [9, 0, 0], sizes = [1, 16, 32], strides = [1, 1, 1]} : vector<10x16x32xf32> to vector<1x16x32xf32>
    %50 = vector.shape_cast %49 : vector<1x16x32xf32> to vector<16x32xf32>
    %51 = vector.broadcast %48 : f32 to vector<16x32xf32>
    %52 = arith.mulf %51, %50 : vector<16x32xf32>
    %53 = arith.addf %47, %52 : vector<16x32xf32>
    %54 = vector.shape_cast %43 : vector<16x32xf32> to vector<1x16x32xf32>
    %55 = vector.extract_strided_slice %27 {offsets = [1, 0, 0], sizes = [8, 16, 32], strides = [1, 1, 1]} : vector<10x16x32xf32> to vector<8x16x32xf32>
    %56 = vector.shape_cast %53 : vector<16x32xf32> to vector<1x16x32xf32>
    %57 = tpu.concatenate %54, %55, %56 in 0 : vector<1x16x32xf32>, vector<8x16x32xf32>, vector<1x16x32xf32> -> vector<10x16x32xf32>
    %58 = vector.extract_strided_slice %57 {offsets = [0, 1, 0], sizes = [10, 1, 32], strides = [1, 1, 1]} : vector<10x16x32xf32> to vector<10x1x32xf32>
    %59 = vector.extract_strided_slice %57 {offsets = [0, 14, 0], sizes = [10, 1, 32], strides = [1, 1, 1]} : vector<10x16x32xf32> to vector<10x1x32xf32>
    %60 = tpu.concatenate %58, %57, %59 in 1 : vector<10x1x32xf32>, vector<10x16x32xf32>, vector<10x1x32xf32> -> vector<10x18x32xf32>
    %61 = arith.truncf %60 : vector<10x18x32xf32> to vector<10x18x32xbf16>
    %c0_13 = arith.constant 0 : index
    %c0_14 = arith.constant 0 : index
    %c0_15 = arith.constant 0 : index
    %62 = vector.load %arg5[%c0_13, %c0_14, %c0_15] : memref<3x96x36xbf16, #tpu.memory_space<vmem>>, vector<3x96x36xbf16>
    %63 = vector.extract_strided_slice %61 {offsets = [0, 0, 0], sizes = [10, 16, 32], strides = [1, 1, 1]} : vector<10x18x32xbf16> to vector<10x16x32xbf16>
    %64 = vector.extract_strided_slice %61 {offsets = [0, 1, 0], sizes = [10, 16, 32], strides = [1, 1, 1]} : vector<10x18x32xbf16> to vector<10x16x32xbf16>
    %65 = vector.extract_strided_slice %61 {offsets = [0, 2, 0], sizes = [10, 16, 32], strides = [1, 1, 1]} : vector<10x18x32xbf16> to vector<10x16x32xbf16>
    %66 = tpu.concatenate %63, %64, %65 in 2 : vector<10x16x32xbf16>, vector<10x16x32xbf16>, vector<10x16x32xbf16> -> vector<10x16x96xbf16>
    %67 = vector.extract_strided_slice %66 {offsets = [0, 0, 0], sizes = [8, 16, 96], strides = [1, 1, 1]} : vector<10x16x96xbf16> to vector<8x16x96xbf16>
    %68 = vector.shape_cast %67 : vector<8x16x96xbf16> to vector<128x96xbf16>
    %69 = vector.extract_strided_slice %62 {offsets = [0, 0, 0], sizes = [1, 96, 36], strides = [1, 1, 1]} : vector<3x96x36xbf16> to vector<1x96x36xbf16>
    %70 = vector.shape_cast %69 : vector<1x96x36xbf16> to vector<96x36xbf16>
    %cst_16 = arith.constant dense<0.000000e+00> : vector<128x36xf32>
    %71 = tpu.matmul %68, %70, %cst_16 {dimension_numbers = #tpu.dot_dimension_numbers<[1], [0], [0], [1], [0, 0, 1, 1], [], []>} : vector<128x96xbf16>, vector<96x36xbf16>, vector<128x36xf32> -> vector<128x36xf32>
    %72 = vector.extract_strided_slice %66 {offsets = [1, 0, 0], sizes = [8, 16, 96], strides = [1, 1, 1]} : vector<10x16x96xbf16> to vector<8x16x96xbf16>
    %73 = vector.shape_cast %72 : vector<8x16x96xbf16> to vector<128x96xbf16>
    %74 = vector.extract_strided_slice %62 {offsets = [1, 0, 0], sizes = [1, 96, 36], strides = [1, 1, 1]} : vector<3x96x36xbf16> to vector<1x96x36xbf16>
    %75 = vector.shape_cast %74 : vector<1x96x36xbf16> to vector<96x36xbf16>
    %cst_17 = arith.constant dense<0.000000e+00> : vector<128x36xf32>
    %76 = tpu.matmul %73, %75, %cst_17 {dimension_numbers = #tpu.dot_dimension_numbers<[1], [0], [0], [1], [0, 0, 1, 1], [], []>} : vector<128x96xbf16>, vector<96x36xbf16>, vector<128x36xf32> -> vector<128x36xf32>
    %77 = arith.addf %71, %76 : vector<128x36xf32>
    %78 = vector.extract_strided_slice %66 {offsets = [2, 0, 0], sizes = [8, 16, 96], strides = [1, 1, 1]} : vector<10x16x96xbf16> to vector<8x16x96xbf16>
    %79 = vector.shape_cast %78 : vector<8x16x96xbf16> to vector<128x96xbf16>
    %80 = vector.extract_strided_slice %62 {offsets = [2, 0, 0], sizes = [1, 96, 36], strides = [1, 1, 1]} : vector<3x96x36xbf16> to vector<1x96x36xbf16>
    %81 = vector.shape_cast %80 : vector<1x96x36xbf16> to vector<96x36xbf16>
    %cst_18 = arith.constant dense<0.000000e+00> : vector<128x36xf32>
    %82 = tpu.matmul %79, %81, %cst_18 {dimension_numbers = #tpu.dot_dimension_numbers<[1], [0], [0], [1], [0, 0, 1, 1], [], []>} : vector<128x96xbf16>, vector<96x36xbf16>, vector<128x36xf32> -> vector<128x36xf32>
    %83 = arith.addf %77, %82 : vector<128x36xf32>
    %c0_19 = arith.constant 0 : index
    %c0_20 = arith.constant 0 : index
    %84 = vector.load %arg6[%c0_19, %c0_20] : memref<1x36xf32, #tpu.memory_space<vmem>>, vector<1x36xf32>
    %85 = vector.broadcast %84 : vector<1x36xf32> to vector<128x36xf32>
    %86 = arith.addf %83, %85 : vector<128x36xf32>
    %87 = vector.extract_strided_slice %86 {offsets = [0, 0], sizes = [128, 32], strides = [1, 1]} : vector<128x36xf32> to vector<128x32xf32>
    %88 = vector.extract_strided_slice %86 {offsets = [0, 32], sizes = [128, 4], strides = [1, 1]} : vector<128x36xf32> to vector<128x4xf32>
    %cst_21 = arith.constant 5.000000e-01 : f32
    %89 = vector.broadcast %cst_21 : f32 to vector<128x32xf32>
    %90 = arith.mulf %89, %87 : vector<128x32xf32>
    %cst_22 = arith.constant 0.707106769 : f32
    %91 = vector.broadcast %cst_22 : f32 to vector<128x32xf32>
    %92 = arith.mulf %87, %91 : vector<128x32xf32>
    %93 = math.absf %92 : vector<128x32xf32>
    %cst_23 = arith.constant 0.327591091 : f32
    %94 = vector.broadcast %cst_23 : f32 to vector<128x32xf32>
    %95 = arith.mulf %94, %93 : vector<128x32xf32>
    %cst_24 = arith.constant 1.000000e+00 : f32
    %96 = vector.broadcast %cst_24 : f32 to vector<128x32xf32>
    %97 = arith.addf %96, %95 : vector<128x32xf32>
    %cst_25 = arith.constant 1.000000e+00 : f32
    %98 = vector.broadcast %cst_25 : f32 to vector<128x32xf32>
    %99 = arith.divf %98, %97 : vector<128x32xf32>
    %cst_26 = arith.constant 1.06140542 : f32
    %100 = vector.broadcast %cst_26 : f32 to vector<128x32xf32>
    %101 = arith.mulf %100, %99 : vector<128x32xf32>
    %cst_27 = arith.constant -1.45315206 : f32
    %102 = vector.broadcast %cst_27 : f32 to vector<128x32xf32>
    %103 = arith.addf %101, %102 : vector<128x32xf32>
    %104 = arith.mulf %103, %99 : vector<128x32xf32>
    %cst_28 = arith.constant 1.42141378 : f32
    %105 = vector.broadcast %cst_28 : f32 to vector<128x32xf32>
    %106 = arith.addf %104, %105 : vector<128x32xf32>
    %107 = arith.mulf %106, %99 : vector<128x32xf32>
    %cst_29 = arith.constant -0.284496725 : f32
    %108 = vector.broadcast %cst_29 : f32 to vector<128x32xf32>
    %109 = arith.addf %107, %108 : vector<128x32xf32>
    %110 = arith.mulf %109, %99 : vector<128x32xf32>
    %cst_30 = arith.constant 0.254829586 : f32
    %111 = vector.broadcast %cst_30 : f32 to vector<128x32xf32>
    %112 = arith.addf %110, %111 : vector<128x32xf32>
    %113 = arith.mulf %112, %99 : vector<128x32xf32>
    %114 = arith.mulf %93, %93 : vector<128x32xf32>
    %cst_31 = arith.constant 0.000000e+00 : f32
    %115 = vector.broadcast %cst_31 : f32 to vector<128x32xf32>
    %116 = arith.subf %115, %114 : vector<128x32xf32>
    %117 = math.exp %116 : vector<128x32xf32>
    %118 = arith.mulf %113, %117 : vector<128x32xf32>
    %cst_32 = arith.constant 1.000000e+00 : f32
    %119 = vector.broadcast %cst_32 : f32 to vector<128x32xf32>
    %120 = arith.subf %119, %118 : vector<128x32xf32>
    %cst_33 = arith.constant 0.000000e+00 : f32
    %121 = vector.broadcast %cst_33 : f32 to vector<128x32xf32>
    %122 = arith.cmpf olt, %92, %121 : vector<128x32xf32>
    %cst_34 = arith.constant 0.000000e+00 : f32
    %123 = vector.broadcast %cst_34 : f32 to vector<128x32xf32>
    %124 = arith.subf %123, %120 : vector<128x32xf32>
    %125 = arith.select %122, %124, %120 : vector<128x32xi1>, vector<128x32xf32>
    %cst_35 = arith.constant 1.000000e+00 : f32
    %126 = vector.broadcast %cst_35 : f32 to vector<128x32xf32>
    %127 = arith.addf %126, %125 : vector<128x32xf32>
    %128 = arith.mulf %90, %127 : vector<128x32xf32>
    %129 = arith.truncf %128 : vector<128x32xf32> to vector<128x32xbf16>
    %c0_36 = arith.constant 0 : index
    %c0_37 = arith.constant 0 : index
    %130 = vector.load %arg7[%c0_36, %c0_37] : memref<32x12xbf16, #tpu.memory_space<vmem>>, vector<32x12xbf16>
    %cst_38 = arith.constant dense<0.000000e+00> : vector<128x12xf32>
    %131 = tpu.matmul %129, %130, %cst_38 {dimension_numbers = #tpu.dot_dimension_numbers<[1], [0], [0], [1], [0, 0, 1, 1], [], []>} : vector<128x32xbf16>, vector<32x12xbf16>, vector<128x12xf32> -> vector<128x12xf32>
    %c0_39 = arith.constant 0 : index
    %c0_40 = arith.constant 0 : index
    %132 = vector.load %arg8[%c0_39, %c0_40] : memref<1x12xf32, #tpu.memory_space<vmem>>, vector<1x12xf32>
    %133 = vector.broadcast %132 : vector<1x12xf32> to vector<128x12xf32>
    %134 = arith.addf %131, %133 : vector<128x12xf32>
    %135 = tpu.concatenate %134, %88 in 1 : vector<128x12xf32>, vector<128x4xf32> -> vector<128x16xf32>
    %136 = vector.shape_cast %135 : vector<128x16xf32> to vector<1x8x16x16xf32>
    %c0_41 = arith.constant 0 : index
    %c0_42 = arith.constant 0 : index
    %c0_43 = arith.constant 0 : index
    %c0_44 = arith.constant 0 : index
    %137 = vector.load %arg9[%c0_41, %c0_42, %c0_43, %c0_44] : memref<1x8x16x16xf32, #tpu.memory_space<vmem>>, vector<1x8x16x16xf32>
    tpu.vector_store %arg9[%c0_41, %c0_42, %c0_43, %c0_44], %136 {strides = array<i32>} : memref<1x8x16x16xf32, #tpu.memory_space<vmem>>, vector<1x8x16x16xf32>,
    return
  }
  func.func @transform_0(%arg0: i32, %arg1: i32) -> (i32, i32, i32, i32, i32) {
    %c0_i32 = arith.constant 0 : i32
    %c0_i32_0 = arith.constant 0 : i32
    %c0_i32_1 = arith.constant 0 : i32
    %c0_i32_2 = arith.constant 0 : i32
    return %arg0, %arg1, %c0_i32, %c0_i32_0, %c0_i32_1 : i32, i32, i32, i32, i32
  }
  func.func @transform_1(%arg0: i32, %arg1: i32) -> (i32, i32, i32) {
    %c0_i32 = arith.constant 0 : i32
    %c0_i32_0 = arith.constant 0 : i32
    %c0_i32_1 = arith.constant 0 : i32
    %c0_i32_2 = arith.constant 0 : i32
    return %c0_i32, %c0_i32_0, %c0_i32_1 : i32, i32, i32
  }
  func.func @transform_2(%arg0: i32, %arg1: i32) -> (i32, i32) {
    %c0_i32 = arith.constant 0 : i32
    %c0_i32_0 = arith.constant 0 : i32
    %c0_i32_1 = arith.constant 0 : i32
    return %c0_i32, %c0_i32_0 : i32, i32
  }
  func.func @transform_3(%arg0: i32, %arg1: i32) -> (i32, i32, i32) {
    %c0_i32 = arith.constant 0 : i32
    %c0_i32_0 = arith.constant 0 : i32
    %c0_i32_1 = arith.constant 0 : i32
    %c0_i32_2 = arith.constant 0 : i32
    return %c0_i32, %c0_i32_0, %c0_i32_1 : i32, i32, i32
  }
  func.func @transform_4(%arg0: i32, %arg1: i32) -> (i32, i32) {
    %c0_i32 = arith.constant 0 : i32
    %c0_i32_0 = arith.constant 0 : i32
    %c0_i32_1 = arith.constant 0 : i32
    return %c0_i32, %c0_i32_0 : i32, i32
  }
  func.func @transform_5(%arg0: i32, %arg1: i32) -> (i32, i32) {
    %c0_i32 = arith.constant 0 : i32
    %c0_i32_0 = arith.constant 0 : i32
    %c0_i32_1 = arith.constant 0 : i32
    return %c0_i32, %c0_i32_0 : i32, i32
  }
  func.func @transform_6(%arg0: i32, %arg1: i32) -> (i32, i32) {
    %c0_i32 = arith.constant 0 : i32
    %c0_i32_0 = arith.constant 0 : i32
    %c0_i32_1 = arith.constant 0 : i32
    return %c0_i32, %c0_i32_0 : i32, i32
  }
  func.func @transform_7(%arg0: i32, %arg1: i32) -> (i32, i32, i32, i32) {
    %c0_i32 = arith.constant 0 : i32
    %c0_i32_0 = arith.constant 0 : i32
    %c0_i32_1 = arith.constant 0 : i32
    return %arg0, %arg1, %c0_i32, %c0_i32_0 : i32, i32, i32, i32
  }
}

</mosaic_0001>

<bundles_post_ra>
// kernel: cans_forward.1
= control target key start
LH: loop header
LB: loop body
LE: loop exit
PB: predicated region body
PF: predicated region fallthrough
CT: control target
= control target key end

     0   :  { %s3594_s24 = smov 0   ;;  %s3596_s25 = smov 0   ;;  %s4661_s0 = inlined_call_operand.vmem [shape: bf16[2,2,12,18,4], index: 0, kind: input, shape index: {}]   ;;  %s4662_s1 = inlined_call_operand.vmem [shape: bf16[3,12,32], index: 1, kind: input, shape index: {}]   ;;  %s4663_s2 = inlined_call_operand.vmem [shape: f32[1,32], index: 2, kind: input, shape index: {}]   ;;  %s4664_s3 = inlined_call_operand.vmem [shape: bf16[3,96,36], index: 3, kind: input, shape index: {}]   ;;  %s4665_s4 = inlined_call_operand.vmem [shape: f32[1,36], index: 4, kind: input, shape index: {}]   ;;  %s4666_s5 = inlined_call_operand.vmem [shape: bf16[32,12], index: 5, kind: input, shape index: {}]   ;;  %s4667_s6 = inlined_call_operand.vmem [shape: f32[1,12], index: 6, kind: input, shape index: {}]   ;;  %s4668_s7 = inlined_call_operand.vmem [shape: f32[2,16,16,16], index: 7, kind: output, shape index: {}]  }
   0x1   :  { %s3598_s26 = smov 0   ;;  %s3600_s27 = smov 0  }
   0x2   :  { %s3602_s28 = smov 0  }
   0x3 LB: > { %s26_s29 = sadd.s32 1, %s3539_s26  ;;  %s29_s30 = sadd.s32 1, %s3543_s27  ;;  %s3547_s28 = sphi %s3602_s28, %s17_s28   ;;  %s3543_s27 = sphi %s3600_s27, %s4672_s27   ;;  %s3539_s26 = sphi %s3598_s26, %s4671_s26   ;;  %s3535_s25 = sphi %s3596_s25, %s4670_s25   ;;  %s3531_s24 = sphi %s3594_s24, %s4669_s24  }
   0x4   : > { %p27_p0 = scmp.ge.s32.totalorder %s26_s29, 2  ;;  %p2889_p1 = scmp.ge.s32.totalorder %s3547_s28, 1 }
   0x5   : > { %p257_p2 = scmp.lt.s32.totalorder %s3547_s28, 5 }
   0x6   : > { %s4674_s29 = smov (%p27_p0, %s26_s29), 0  ;;  %s4676_s30 = smov (!%p27_p0, %s29_s30), %s3543_s27 }
   0x7   : > { %p258_p3 = pnand %p2889_p1, %p257_p2  ;;  %p31_p4 = scmp.ge.s32.totalorder %s4676_s30, 2 }
   0x8   : > { %p298_p5 = scmp.lt.s32.totalorder (!%p258_p3), %s3535_s25, 1  ;;  %p300_p6 = scmp.lt.s32.totalorder (!%p258_p3), %s3531_s24, 1  ;;  %v3420_v0 = vld [vmem:[%s4662_s1 + $0x8] sm:$0x3f] (!%p258_p3)   ;;  %vm763_vm0 = vcmask (!%p258_p3), 1045504   ;;  %vm626_vm1 = vcmask (!%p258_p3), 1046528  }
   0x9   : > { %s4678_s30 = smov (%p31_p4, %s4676_s30), 0  ;;  %261 = sbr.rel (%p258_p3) target bundleno = 1220 (0x4c4), region = 48 }
   0xa   : > { %vm457_vm2 = vsmask.f32 (!%p258_p3), 7424  ;;  %3348 = vmatprep.subr.msk.bf16.mxu0 (!%p258_p3), %vm763_vm0, %v3420_v0  ;;  %v765_v1 = vsel (!%p258_p3), %vm763_vm0, %v3420_v0, 0  ;;  %s3549_s18 = smov (!%p258_p3), 8   ;;  %s3550_s19 = smov (!%p258_p3), 4   ;;  %vm687_vm3 = vcmask (!%p258_p3), 31744  }
   0xb   : > { %3095 = vmatpush3.bf16.msra.mxu0 (!%p258_p3), %v765_v1  ;;  %vm712_vm4 = vcmask (!%p258_p3), 64512   ;;  %vm742_vm5 = vcmask (!%p258_p3), 97280   ;;  %p1173_p7 = scmp.eq.s32.totalorder (!%p258_p3), %s3531_s24, 0  ;;  %vm1237_vm6 = vcmask (!%p258_p3), 1040384   ;;  %p1176_p8 = scmp.eq.s32.totalorder (!%p258_p3), %s3531_s24, 1  ;;  %vm1604_vm7 = vcmask (!%p258_p3), 261120  }
   0xc   : > { %s3551_s12 = smov (!%p258_p3), 32   ;;  %s3552_s15 = smov (!%p258_p3), 64   ;;  %vm1625_vm8 = vcmask (!%p258_p3), 523264   ;;  %vm1682_vm9 = vcmask (!%p258_p3), 785408  }
   0xd   : > { %s2891_s13 = sshll.u32 (!%p258_p3), %s3531_s24, 3 }
   0xe   : > { %p310_p9 = scmp.lt.s32.totalorder (!%p258_p3), %s2891_s13, 15 }
  0x10   : > { %s4680_s25 = smov (!%p298_p5, %s3535_s25), 1  ;;  %s4682_s13 = smov (!%p310_p9, %s2891_s13), 15 }
  0x11   : > { %s301_s8 = scalar_select %p300_p6, %s3531_s24, 1 }
  0x12   : > { %s3352_s9 = smul.u32 72, %s4680_s25 }
  0x13   : > { %s3351_s10 = smul.u32 36, %s301_s8 }
  0x15   : > { %s304_s11 = sadd.s32 %s3352_s9, %s3351_s10 }
  0x16   : > { %s2890_s14 = sshll.u32 %s304_s11, 2 }
  0x17   : > { %s3637_s17 = scalar_lea.vmem %s4661_s0, %s2890_s14 }
  0x18   : > { %v3642_v2 = vld [vmem:[%s3637_s17 + $0xc] sm:$0xff]   ;;  %v3399_v3 = vld [vmem:[%s3637_s17 + $0x14] ss:$0 sps:$4 sm:$0x11]   ;;  %v3646_v4 = vld [vmem:[%s3637_s17 + $0x18] sm:$0xff]  }
  0x19   : > { %v630_v5 = vrot.slane %v3642_v2, 1  ;;  %v631_v6 = vrot.slane %v3399_v3, 1  ;;  %v471_v7 = vshrl.u32 %v3642_v2, 16  ;;  %v473_v8 = vshll.u32 %v3642_v2, 16  ;;  %v3658_v19 = vld [vmem:[%s3637_s17 + $0x30] sm:$0xff]   ;;  %v3665_v27 = vld [vmem:[%s3637_s17 + $0x24] sm:$0xff]  }
  0x1a   : > { %v478_v9 = vshll.u32 %v3399_v3, 16  ;;  %v3401_v10 = vld [vmem:[%s3637_s17 + $0x20] ss:$0 sps:$4 sm:$0x11]   ;;  %v633_v11 = vrot.slane %v3646_v4, 1  ;;  %v483_v12 = vshrl.u32 %v3646_v4, 16 }
  0x1b   : > { %v632_v13 = vsel %vm626_vm1, %v630_v5, %v631_v6  ;;  %v475_v14 = vrot.slane %v473_v8, 1  ;;  %v485_v15 = vshll.u32 %v3646_v4, 16  ;;  %v634_v17 = vrot.slane %v3401_v10, 1  ;;  %v3403_v22 = vld [vmem:[%s3637_s17 + $0x38] ss:$0 sps:$4 sm:$0x11]  }
  0x1c   : > { %665 = vrot.lane.b32.xlu1 %v632_v13, %s3549_s18  ;;  %v480_v16 = vrot.slane %v478_v9, 1  ;;  %v490_v18 = vshll.u32 %v3401_v10, 16  ;;  %v507_v25 = vshrl.u32 %v3658_v19, 16  ;;  %v509_v26 = vshll.u32 %v3658_v19, 16  ;;  %v3670_v32 = vld [vmem:[%s3637_s17 + $0x48] sm:$0xff]   ;;  %v3679_v41 = vld [vmem:[%s3637_s17 + $0x3c] sm:$0xff]  }
  0x1d   : > { %v476_v20 = vor.u32 %v475_v14, %v471_v7  ;;  %v487_v21 = vrot.slane %v485_v15, 1  ;;  %v635_v23 = vsel %vm626_vm1, %v633_v11, %v634_v17  ;;  %v514_v30 = vshll.u32 %v3403_v22, 16  ;;  %v3405_v31 = vld [vmem:[%s3637_s17 + $0x2c] ss:$0 sps:$4 sm:$0x11]   ;;  %v3694_v59 = vld [vmem:[%s3637_s17 + $0x60] sm:$0xff]  }
  0x1e   : > { %v492_v24 = vrot.slane %v490_v18, 1  ;;  %v511_v33 = vrot.slane %v509_v26, 1  ;;  %v495_v34 = vshrl.u32 %v3665_v27, 16  ;;  %v497_v35 = vshll.u32 %v3665_v27, 16  ;;  %v3697_v0 = vld [vmem:[%s3637_s17 + $0x54] sm:$0xff]  }
  0x1f   : > { %v481_v28 = vsel %vm457_vm2, %v476_v20, %v480_v16  ;;  %v488_v29 = vor.u32 %v487_v21, %v483_v12  ;;  %v639_v36 = vrot.slane %v3658_v19, 1  ;;  %v516_v38 = vrot.slane %v514_v30, 1  ;;  %v3407_v46 = vld [vmem:[%s3637_s17 + $0x50] ss:$0 sps:$4 sm:$0x11]   ;;  %v3708_v13 = vld [vmem:[%s3637_s17 + $0x78] sm:$0xff]  }
  0x20   : > { %604 = vrot.lane.b32.xlu0 %v481_v28, %s3550_s19  ;;  %667 = vrot.lane.b32.xlu1 %v635_v23, %s3549_s18  ;;  %v502_v39 = vshll.u32 %v3405_v31, 16  ;;  %v640_v40 = vrot.slane %v3403_v22, 1  ;;  %v512_v42 = vor.u32 %v511_v33, %v507_v25  ;;  %v499_v43 = vrot.slane %v497_v35, 1  ;;  %v3409_v55 = vld [vmem:[%s3637_s17 + $0x44] ss:$0 sps:$4 sm:$0x11]  }
  0x21   : > { %v493_v37 = vsel %vm457_vm2, %v488_v29, %v492_v24  ;;  %v636_v44 = vrot.slane %v3665_v27, 1  ;;  %v531_v47 = vshrl.u32 %v3670_v32, 16  ;;  %v533_v48 = vshll.u32 %v3670_v32, 16  ;;  %v3411_v3 = vld [vmem:[%s3637_s17 + $0x68] ss:$0 sps:$4 sm:$0x11]  }
  0x22   : > { %v504_v45 = vrot.slane %v502_v39, 1  ;;  %v517_v49 = vsel %vm457_vm2, %v512_v42, %v516_v38  ;;  %v500_v50 = vor.u32 %v499_v43, %v495_v34  ;;  %v637_v51 = vrot.slane %v3405_v31, 1  ;;  %v3413_v15 = vld [vmem:[%s3637_s17 + $0x5c] ss:$0 sps:$4 sm:$0x11]   ;;  %v3716_v21 = vld [vmem:[%s3637_s17 + $0x6c] sm:$0xff]  }
  0x23   : > { %v519_v52 = vshrl.u32 %v3679_v41, 16  ;;  %v535_v53 = vrot.slane %v533_v48, 1  ;;  %v538_v54 = vshll.u32 %v3407_v46, 16  ;;  %v521_v56 = vshll.u32 %v3679_v41, 16  ;;  %s1174_s14 = scalar_select %p1173_p7, 1, 0 }
  0x24   : > { %606 = vrot.lane.b32.xlu0 %v493_v37, %s3550_s19  ;;  %610 = vrot.lane.b32.xlu1 %v517_v49, %s3550_s19  ;;  %v505_v57 = vsel %vm457_vm2, %v500_v50, %v504_v45  ;;  %v641_v58 = vsel %vm626_vm1, %v639_v36, %v640_v40  ;;  %v526_v63 = vshll.u32 %v3409_v55, 16  ;;  %v645_v1 = vrot.slane %v3670_v32, 1  ;;  %v3415_v29 = vld [vmem:[%s3637_s17 + $0x80] ss:$0 sps:$4 sm:$0x11]  }
  0x25   : > { %v536_v60 = vor.u32 %v535_v53, %v531_v47  ;;  %v540_v61 = vrot.slane %v538_v54, 1  ;;  %v523_v62 = vrot.slane %v521_v56, 1  ;;  %v638_v5 = vsel %vm626_vm1, %v636_v44, %v637_v51  ;;  %v3417_v39 = vld [vmem:[%s3637_s17 + $0x74] ss:$0 sps:$4 sm:$0x11]   ;;  %v3731_v40 = vld [vmem:[%s3637_s17] sm:$0xff]  }
  0x26   : > { %v528_v7 = vrot.slane %v526_v63, 1  ;;  %v646_v8 = vrot.slane %v3407_v46, 1  ;;  %v555_v10 = vshrl.u32 %v3694_v59, 16  ;;  %v557_v11 = vshll.u32 %v3694_v59, 16  ;;  %v3742_v53 = vld [vmem:[%s3637_s17 + $0x84] sm:$0xff]  }
  0x27   : > { %v524_v6 = vor.u32 %v523_v62, %v519_v52  ;;  %v541_v9 = vsel %vm457_vm2, %v536_v60, %v540_v61  ;;  %v562_v12 = vshll.u32 %v3411_v3, 16  ;;  %v642_v14 = vrot.slane %v3679_v41, 1  ;;  %v3419_v50 = vld [vmem:[%s3637_s17 + $0x8] ss:$0 sps:$4 sm:$0x11]  }
  0x28   : > { %608 = vrot.lane.b32.xlu0 %v505_v57, %s3550_s19  ;;  %671 = vrot.lane.b32.xlu1 %v641_v58, %s3549_s18  ;;  %v545_v16 = vshll.u32 %v3697_v0, 16  ;;  %v643_v17 = vrot.slane %v3409_v55, 1  ;;  %v559_v18 = vrot.slane %v557_v11, 1  ;;  %v543_v20 = vshrl.u32 %v3697_v0, 16  ;;  %v3423_v63 = vld [vmem:[%s4662_s1] sm:$0x3f]  }
  0x29   : > { %v529_v22 = vsel %vm457_vm2, %v524_v6, %v528_v7  ;;  %v564_v23 = vrot.slane %v562_v12, 1  ;;  %v550_v25 = vshll.u32 %v3413_v15, 16  ;;  %v647_v26 = vsel %vm626_vm1, %v645_v1, %v646_v8  ;;  %3349 = vmatprep.subr.msk.bf16.mxu0 %vm763_vm0, %v3423_v63 }
  0x2a   : > { %v547_v24 = vrot.slane %v545_v16, 1  ;;  %v560_v28 = vor.u32 %v559_v18, %v555_v10  ;;  %v581_v30 = vshll.u32 %v3708_v13, 16  ;;  %v651_v31 = vrot.slane %v3694_v59, 1 }
  0x2b   : > { %v652_v33 = vrot.slane %v3411_v3, 1  ;;  %v569_v34 = vshll.u32 %v3716_v21, 16  ;;  %v644_v35 = vsel %vm626_vm1, %v642_v14, %v643_v17  ;;  %v552_v37 = vrot.slane %v550_v25, 1  ;;  %v3422_v14 = vld [vmem:[%s3637_s17 + $0x8c] ss:$0 sps:$4 sm:$0x11]   ;;  %s1175_s17 = scvt.s32.f32 %s1174_s14 }
  0x2c   : > { %669 = vrot.lane.b32.xlu0 %v638_v5, %s3549_s18  ;;  %614 = vrot.lane.b32.xlu1 %v541_v9, %s3550_s19  ;;  %v548_v36 = vor.u32 %v547_v24, %v543_v20  ;;  %v579_v38 = vshrl.u32 %v3708_v13, 16  ;;  %v565_v42 = vsel %vm457_vm2, %v560_v28, %v564_v23  ;;  %v583_v43 = vrot.slane %v581_v30, 1  ;;  %s2892_s14 = sshll.u32 %s4682_s13, 1 }
  0x2d   : > { %v586_v44 = vshll.u32 %v3415_v29, 16  ;;  %v648_v45 = vrot.slane %v3697_v0, 1  ;;  %v649_v46 = vrot.slane %v3413_v15, 1  ;;  %v567_v47 = vshrl.u32 %v3716_v21, 16 }
  0x2e   : > { %v571_v48 = vrot.slane %v569_v34, 1  ;;  %v574_v49 = vshll.u32 %v3417_v39, 16  ;;  %v553_v51 = vsel %vm457_vm2, %v548_v36, %v552_v37  ;;  %v461_v52 = vshll.u32 %v3731_v40, 16 }
  0x2f   : > { %v653_v54 = vsel %vm626_vm1, %v651_v31, %v652_v33  ;;  %v584_v55 = vor.u32 %v583_v43, %v579_v38  ;;  %v588_v56 = vrot.slane %v586_v44, 1  ;;  %v657_v57 = vrot.slane %v3708_v13, 1 }
  0x30   : > { %612 = vrot.lane.b32.xlu0 %v529_v22, %s3550_s19  ;;  %675 = vrot.lane.b32.xlu1 %v647_v26, %s3549_s18  ;;  %v658_v58 = vrot.slane %v3415_v29, 1  ;;  %v654_v60 = vrot.slane %v3716_v21, 1  ;;  %v655_v61 = vrot.slane %v3417_v39, 1  ;;  %v459_v62 = vshrl.u32 %v3731_v40, 16 }
  0x31   : > { %v650_v1 = vsel %vm626_vm1, %v648_v45, %v649_v46  ;;  %v572_v3 = vor.u32 %v571_v48, %v567_v47  ;;  %v576_v5 = vrot.slane %v574_v49, 1  ;;  %v627_v6 = vrot.slane %v3731_v40, 1  ;;  %v3424_v45 = vld [vmem:[%s4662_s1 + $0x10] sm:$0x3f]  }
  0x32   : > { %v463_v7 = vrot.slane %v461_v52, 1  ;;  %v466_v8 = vshll.u32 %v3419_v50, 16  ;;  %v591_v9 = vshrl.u32 %v3742_v53, 16  ;;  %v593_v10 = vshll.u32 %v3742_v53, 16 }
  0x33   : > { %v589_v11 = vsel %vm457_vm2, %v584_v55, %v588_v56  ;;  %v628_v12 = vrot.slane %v3419_v50, 1  ;;  %v660_v15 = vrot.slane %v3742_v53, 1  ;;  %v577_v16 = vsel %vm457_vm2, %v572_v3, %v576_v5 }
  0x34   : > { %673 = vrot.lane.b32.xlu0 %v644_v35, %s3549_s18  ;;  %618 = vrot.lane.b32.xlu1 %v565_v42, %s3550_s19  ;;  %v468_v17 = vrot.slane %v466_v8, 1  ;;  %v595_v18 = vrot.slane %v593_v10, 1  ;;  %v659_v20 = vsel %vm626_vm1, %v657_v57, %v658_v58  ;;  %v656_v22 = vsel %vm626_vm1, %v654_v60, %v655_v61 }
  0x35   : > { %v464_v23 = vor.u32 %v463_v7, %v459_v62  ;;  %v598_v24 = vshll.u32 %v3422_v14, 16  ;;  %v661_v25 = vrot.slane %v3422_v14, 1  ;;  %v629_v26 = vsel %vm626_vm1, %v627_v6, %v628_v12 }
  0x36   : > { %v596_v29 = vor.u32 %v595_v18, %v591_v9  ;;  %v888_v44 = vsel %vm763_vm0, %v3423_v63, 0 }
  0x37   : > { %v469_v28 = vsel %vm457_vm2, %v464_v23, %v468_v17  ;;  %v600_v30 = vrot.slane %v598_v24, 1  ;;  %v662_v31 = vsel %vm626_vm1, %v660_v15, %v661_v25 }
  0x38   : > { %616 = vrot.lane.b32.xlu0 %v553_v51, %s3550_s19  ;;  %679 = vrot.lane.b32.xlu1 %v653_v54, %s3549_s18 }
  0x39   : > { %v601_v33 = vsel %vm457_vm2, %v596_v29, %v600_v30 }
  0x3c   : > { %677 = vrot.lane.b32.xlu0 %v650_v1, %s3549_s18  ;;  %622 = vrot.lane.b32.xlu1 %v589_v11, %s3550_s19 }
  0x40   : > { %620 = vrot.lane.b32.xlu0 %v577_v16, %s3550_s19  ;;  %683 = vrot.lane.b32.xlu1 %v659_v20, %s3549_s18  ;;  %v1011_v16 = vsel %vm763_vm0, %v3424_v45, 0  ;;  %v3427_v20 = vld [vmem:[%s4664_s3 + $0x40] sm:$0xff]  }
  0x44   : > { %681 = vrot.lane.b32.xlu0 %v656_v22, %s3549_s18  ;;  %663 = vrot.lane.b32.xlu1 %v629_v26, %s3549_s18  ;;  %v3867_v22 = vld [vmem:[%s4663_s2] ss:$0 sm:$0xff] }
  0x48   : > { %602 = vrot.lane.b32.xlu0 %v469_v28, %s3550_s19  ;;  %685 = vrot.lane.b32.xlu1 %v662_v31, %s3549_s18  ;;  %s3873_s18 = ssub.f32 1.0, %s1175_s17 }
  0x4c   : > { %624 = vrot.lane.b32.xlu0 %v601_v33, %s3550_s19  ;;  %s3886_s19 = scalar_select %p1176_p8, 1, 0 }
  0x4e   : > { %s1178_s20 = scvt.s32.f32 %s3886_s19 }
  0x50   : > { %s3900_s21 = ssub.f32 1.0, %s1178_s20 }
  0x8e   : > { %v666_v34 = vpop.permute.xlu1 %665 }
  0x92   : > { %v605_v35 = vpop.permute.xlu0 %604  ;;  %v668_v36 = vpop.permute.xlu1 %667 }
  0x93   : > { %v691_v37 = vsel %vm687_vm3, %v3642_v2, %v605_v35 }
  0x94   : > { %v716_v38 = vsel %vm712_vm4, %v691_v37, %v666_v34 }
  0x95   : > { %3096 = vmatprep.mubr.msk.bf16.mxu0 %vm742_vm5, %v716_v38 }
  0x96   : > { %v607_v39 = vpop.permute.xlu0 %606  ;;  %v611_v43 = vpop.permute.xlu1 %610 }
  0x97   : > { %v693_v42 = vsel %vm687_vm3, %v3646_v4, %v607_v39  ;;  %v697_v4 = vsel %vm687_vm3, %v3658_v19, %v611_v43  ;;  %v1183_v39 = vstv %s3873_s18 }
  0x98   : > { %v3788_v46 = vsel %vm712_vm4, %v693_v42, %v668_v36 }
  0x99   : > { %3097 = vmatmul.mubr.msk.bf16.vlgmr.msra.gmra.mrb[0].mxu0 %vm742_vm5, %v3788_v46 }
  0x9a   : > { %3117 = vmatpush3.bf16.msra.mxu0 %v888_v44  ;;  %v609_v2 = vpop.permute.xlu0 %608  ;;  %v672_v47 = vpop.permute.xlu1 %671  ;;  %v1179_v44 = vstv %s1175_s17 }
  0x9b   : > { %3350 = vmatprep.subr.msk.bf16.mxu0 %vm763_vm0, %v3424_v45  ;;  %v695_v48 = vsel %vm687_vm3, %v3665_v27, %v609_v2  ;;  %v722_v52 = vsel %vm712_vm4, %v697_v4, %v672_v47 }
  0x9e   : > { %v670_v49 = vpop.permute.xlu0 %669  ;;  %v615_v51 = vpop.permute.xlu1 %614 }
  0x9f   : > { %v720_v50 = vsel %vm712_vm4, %v695_v48, %v670_v49  ;;  %v701_v56 = vsel %vm687_vm3, %v3670_v32, %v615_v51 }
  0xa0   : > { %3100 = vmatprep.mubr.msk.bf16.mxu0 %vm742_vm5, %v720_v50 }
  0xa1   : > { %3101 = vmatmul.mubr.msk.bf16.gmra.mrb[4].mxu0 %vm742_vm5, %v722_v52 }
  0xa2   : > { %v613_v54 = vpop.permute.xlu0 %612  ;;  %v676_v55 = vpop.permute.xlu1 %675 }
  0xa3   : > { %v699_v19 = vsel %vm687_vm3, %v3679_v41, %v613_v54  ;;  %v726_v60 = vsel %vm712_vm4, %v701_v56, %v676_v55 }
  0xa6   : > { %v674_v57 = vpop.permute.xlu0 %673  ;;  %v619_v58 = vpop.permute.xlu1 %618 }
  0xa7   : > { %v724_v27 = vsel %vm712_vm4, %v699_v19, %v674_v57  ;;  %v705_v63 = vsel %vm687_vm3, %v3694_v59, %v619_v58 }
  0xa8   : > { %3104 = vmatprep.mubr.msk.bf16.mxu0 %vm742_vm5, %v724_v27 }
  0xa9   : > { %3105 = vmatmul.mubr.msk.bf16.gmra.mrb[8].mxu0 %vm742_vm5, %v726_v60 }
  0xaa   : > { %v617_v61 = vpop.permute.xlu0 %616  ;;  %v680_v62 = vpop.permute.xlu1 %679 }
  0xab   : > { %v703_v32 = vsel %vm687_vm3, %v3697_v0, %v617_v61  ;;  %v730_v5 = vsel %vm712_vm4, %v705_v63, %v680_v62 }
  0xae   : > { %v678_v1 = vpop.permute.xlu0 %677  ;;  %v623_v3 = vpop.permute.xlu1 %622 }
  0xaf   : > { %v728_v41 = vsel %vm712_vm4, %v703_v32, %v678_v1  ;;  %v709_v7 = vsel %vm687_vm3, %v3708_v13, %v623_v3 }
  0xb0   : > { %3108 = vmatprep.mubr.msk.bf16.mxu0 %vm742_vm5, %v728_v41 }
  0xb1   : > { %3109 = vmatmul.mubr.msk.bf16.gmra.mrb[12].mxu0 %vm742_vm5, %v730_v5 }
  0xb2   : > { %v621_v6 = vpop.permute.xlu0 %620  ;;  %v684_v8 = vpop.permute.xlu1 %683 }
  0xb3   : > { %v707_v59 = vsel %vm687_vm3, %v3716_v21, %v621_v6  ;;  %v734_v10 = vsel %vm712_vm4, %v709_v7, %v684_v8 }
  0xb6   : > { %v682_v9 = vpop.permute.xlu0 %681  ;;  %v664_v11 = vpop.permute.xlu1 %663 }
  0xb7   : > { %v732_v0 = vsel %vm712_vm4, %v707_v59, %v682_v9 }
  0xb8   : > { %3112 = vmatprep.mubr.msk.bf16.mxu0 %vm742_vm5, %v732_v0 }
  0xb9   : > { %3113 = vmatmul.mubr.msk.bf16.gmra.mrb[16].mxu0 %vm742_vm5, %v734_v10 }
  0xba   : > { %v603_v12 = vpop.permute.xlu0 %602  ;;  %v686_v15 = vpop.permute.xlu1 %685 }
  0xbb   : > { %v689_v14 = vsel %vm687_vm3, %v3731_v40, %v603_v12  ;;  %v3425_v40 = vld [vmem:[%s4664_s3 + $0x30] sm:$0xff]  }
  0xbc   : > { %v714_v13 = vsel %vm712_vm4, %v689_v14, %v664_v11  ;;  %3264 = vmatprep.subr.bf16.mxu1 %v3425_v40  ;;  %v3917_v14 = vstv %s1178_s20 }
  0xbd   : > { %3118 = vmatprep.mubr.msk.bf16.mxu0 %vm742_vm5, %v714_v13  ;;  %3270 = vmatpush3.bf16.msra.mxu1 %v3425_v40 }
  0xbe   : > { %v625_v21 = vpop.permute.xlu0 %624 }
  0xbf   : > { %v711_v17 = vsel %vm687_vm3, %v3742_v53, %v625_v21  ;;  %v3426_v53 = vld [vmem:[%s4664_s3 + $0x38] sm:$0xff]  }
  0xc0   : > { %v736_v18 = vsel %vm712_vm4, %v711_v17, %v686_v15  ;;  %3265 = vmatprep.subr.bf16.mxu1 %v3426_v53  ;;  %v1192_v17 = vstv %s3900_s21 }
  0xc1   : > { %3119 = vmatmul.mubr.msk.bf16.vlgmr.msra.gmra.mrb[0].mxu0 %vm742_vm5, %v716_v38  ;;  %3271 = vmatpush3.bf16.msra.mxu1 %v3426_v53 }
  0xc2   : > { %3139 = vmatpush3.bf16.msra.mxu0 %v1011_v16  ;;  %3122 = vmatprep.mubr.msk.bf16.mxu0 %vm742_vm5, %v3788_v46 }
  0xc3   : > { %3160 = vmatprep.subr.bf16.mxu0 %v3425_v40  ;;  %3266 = vmatprep.subr.bf16.mxu1 %v3427_v20 }
  0xc5   : > { %3272 = vmatpush3.bf16.msra.mxu1 %v3427_v20 }
  0xc9   : > { %3123 = vmatmul.mubr.msk.bf16.gmra.mrb[4].mxu0 %vm742_vm5, %v720_v50 }
  0xca   : > { %3126 = vmatprep.mubr.msk.bf16.mxu0 %vm742_vm5, %v722_v52 }
  0xd1   : > { %3127 = vmatmul.mubr.msk.bf16.gmra.mrb[8].mxu0 %vm742_vm5, %v724_v27 }
  0xd2   : > { %3130 = vmatprep.mubr.msk.bf16.mxu0 %vm742_vm5, %v726_v60 }
  0xd9   : > { %3131 = vmatmul.mubr.msk.bf16.gmra.mrb[12].mxu0 %vm742_vm5, %v728_v41 }
  0xda   : > { %3134 = vmatprep.mubr.msk.bf16.mxu0 %vm742_vm5, %v730_v5 }
  0xe1   : > { %3135 = vmatmul.mubr.msk.bf16.gmra.mrb[16].mxu0 %vm742_vm5, %v732_v0 }
  0xe2   : > { %3140 = vmatprep.mubr.msk.bf16.mxu0 %vm742_vm5, %v3788_v46 }
  0xe9   : > { %3141 = vmatmul.mubr.msk.bf16.vlgmr.msra.gmra.mrb[0].mxu0 %vm742_vm5, %v720_v50 }
  0xea   : > { %3144 = vmatprep.mubr.msk.bf16.mxu0 %vm742_vm5, %v722_v52  ;;  %3161 = vmatpush3.bf16.msra.mxu0 %v3425_v40 }
  0xeb   : > { %3162 = vmatprep.subr.bf16.mxu0 %v3426_v53 }
  0xee   : > { %3163 = vmatpush3.bf16.msra.mxu0 %v3426_v53 }
  0xef   : > { %3164 = vmatprep.subr.bf16.mxu0 %v3427_v20 }
  0xf1   : > { %3145 = vmatmul.mubr.msk.bf16.gmra.mrb[4].mxu0 %vm742_vm5, %v724_v27 }
  0xf2   : > { %3148 = vmatprep.mubr.msk.bf16.mxu0 %vm742_vm5, %v726_v60  ;;  %3165 = vmatpush3.bf16.msra.mxu0 %v3427_v20 }
  0xf9   : > { %3149 = vmatmul.mubr.msk.bf16.gmra.mrb[8].mxu0 %vm742_vm5, %v728_v41 }
  0xfa   : > { %3152 = vmatprep.mubr.msk.bf16.mxu0 %vm742_vm5, %v730_v5  ;;  %v3428_v5 = vld [vmem:[%s4664_s3 + $0x48] sm:$0xff]  }
  0xfb   : > { %3267 = vmatprep.subr.bf16.mxu1 %v3428_v5  ;;  %3166 = vmatprep.subr.bf16.mxu0 %v3428_v5 }
  0xfc   : > { %3273 = vmatpush3.bf16.msra.mxu1 %v3428_v5  ;;  %3167 = vmatpush3.bf16.msra.mxu0 %v3428_v5 }
 0x101   : > { %3153 = vmatmul.mubr.msk.bf16.gmra.mrb[12].mxu0 %vm742_vm5, %v732_v0 }
 0x102   : > { %3156 = vmatprep.mubr.msk.bf16.mxu0 %vm742_vm5, %v734_v10 }
 0x109   : > { %3157 = vmatmul.mubr.msk.bf16.gmra.mrb[16].mxu0 %vm742_vm5, %v736_v18  ;;  %v3429_v18 = vld [vmem:[%s4664_s3 + $0x50] sm:$0xff]  }
 0x10a   : > { %3268 = vmatprep.subr.bf16.mxu1 %v3429_v18  ;;  %3168 = vmatprep.subr.bf16.mxu0 %v3429_v18 }
 0x10b   : > { %3274 = vmatpush3.bf16.msra.mxu1 %v3429_v18  ;;  %3169 = vmatpush3.bf16.msra.mxu0 %v3429_v18 }
 0x1bc   : > { %v3142_v23 = vpop.f32.mrb[0].mxu0 }
 0x1bd   : > { %v1155_v24 = vadd.f32 %v3142_v23, %v3867_v22  ;;  %v1047_v25 = vpop.f32.mrb[1].mxu0 }
 0x1be   : > { %v3143_v26 = vpop.f32.mrb[2].mxu0  ;;  %v1153_v36 = vadd.f32 %v3867_v22, %v1047_v25 }
 0x1bf   : > { %v1208_v28 = vrot.slane %v1155_v24, 1  ;;  %v1241_v29 = vrot.slane %v1155_v24, 7  ;;  %v3871_v30 = vadd.f32 %v3143_v26, %v3867_v22  ;;  %v1050_v31 = vpop.f32.mrb[3].mxu0 }
 0x1c0   : > { %v1154_v2 = vadd.f32 %v3867_v22, %v1050_v31  ;;  %v1184_v50 = vmul.f32 %v1183_v39, %v1153_v36 }
 0x1c1   : > { %v1242_v33 = vrot.slane %v3871_v30, 7  ;;  %v1319_v34 = vsel %vm1237_vm6, %v1208_v28, %v1241_v29 }
 0x1c2   : > { %v1185_v60 = vmul.f32 %v1183_v39, %v1154_v2 }
 0x1c3   : > { %v1243_v35 = vsel %vm1237_vm6, %v1241_v29, %v1242_v33 }
 0x1c4   : > { %v3882_v37 = vpack.c.bf16 %v1243_v35, %v1319_v34  ;;  %v3146_v38 = vpop.f32.mrb[4].mxu0 }
 0x1c5   : > { %v1159_v42 = vadd.f32 %v3146_v38, %v3867_v22  ;;  %v1063_v43 = vpop.f32.mrb[5].mxu0 }
 0x1c6   : > { %v1157_v45 = vadd.f32 %v3867_v22, %v1063_v43  ;;  %v3147_v46 = vpop.f32.mrb[6].mxu0 }
 0x1c7   : > { %v1210_v47 = vrot.slane %v1159_v42, 1  ;;  %v1247_v4 = vrot.slane %v1159_v42, 7  ;;  %v1160_v48 = vadd.f32 %v3147_v46, %v3867_v22  ;;  %v1066_v49 = vpop.f32.mrb[7].mxu0 }
 0x1c8   : > { %v1180_v51 = vmul.f32 %v1179_v44, %v1157_v45  ;;  %v3892_v52 = vadd.f32 %v3867_v22, %v1066_v49  ;;  %v1209_v54 = vrot.slane %v1157_v45, 1  ;;  %v1244_v55 = vrot.slane %v1157_v45, 7 }
 0x1c9   : > { %v1248_v56 = vrot.slane %v1160_v48, 7  ;;  %v1301_v19 = vrot.slane %v1160_v48, 5  ;;  %v1321_v61 = vsel %vm1237_vm6, %v1210_v47, %v1247_v4 }
 0x1ca   : > { %v1186_v57 = vadd.f32 %v1184_v50, %v1180_v51  ;;  %v1181_v27 = vmul.f32 %v1179_v44, %v3892_v52  ;;  %v1245_v58 = vrot.slane %v3892_v52, 7  ;;  %v1320_v6 = vsel %vm1237_vm6, %v1209_v54, %v1244_v55 }
 0x1cb   : > { %v1249_v62 = vsel %vm1237_vm6, %v1247_v4, %v1248_v56  ;;  %v1331_v63 = vsel %vm1237_vm6, %v1248_v56, %v1301_v19 }
 0x1cc   : > { %v1207_v32 = vrot.slane %v1186_v57, 1  ;;  %v1238_v1 = vrot.slane %v1186_v57, 7  ;;  %v3902_v41 = vpack.c.bf16 %v1249_v62, %v1321_v61  ;;  %v3150_v3 = vpop.f32.mrb[8].mxu0  ;;  %v3908_v7 = vadd.f32 %v1185_v60, %v1181_v27 }
 0x1cd   : > { %v1246_v8 = vsel %vm1237_vm6, %v1244_v55, %v1245_v58  ;;  %v1163_v59 = vadd.f32 %v3150_v3, %v3867_v22  ;;  %v1079_v9 = vpop.f32.mrb[9].mxu0  ;;  %v1345_v0 = vpack.c.bf16 %v1331_v63, %v1331_v63  ;;  %v3430_v63 = vld [vmem:[%s4664_s3 + $0x58] sm:$0xff]  }
 0x1ce   : > { %v3914_v10 = vpack.c.bf16 %v1246_v8, %v1320_v6  ;;  %v1161_v11 = vadd.f32 %v3867_v22, %v1079_v9  ;;  %v3151_v12 = vpop.f32.mrb[10].mxu0  ;;  %v1239_v13 = vrot.slane %v3908_v7, 7  ;;  %v1318_v40 = vsel %vm1237_vm6, %v1207_v32, %v1238_v1  ;;  %3269 = vmatprep.subr.bf16.mxu1 %v3430_v63  ;;  %3170 = vmatprep.subr.bf16.mxu0 %v3430_v63 }
 0x1cf   : > { %v1212_v15 = vrot.slane %v1163_v59, 1  ;;  %v1253_v21 = vrot.slane %v1163_v59, 7  ;;  %v1082_v16 = vpop.f32.mrb[11].mxu0  ;;  %v1164_v53 = vadd.f32 %v3151_v12, %v3867_v22  ;;  %v1431_v23 = vshrl.u32 %v3902_v41, 16  ;;  %3275 = vmatpush3.bf16.msra.mxu1 %v3430_v63  ;;  %3171 = vmatpush3.bf16.msra.mxu0 %v3430_v63 }
 0x1d0   : > { %v1162_v20 = vadd.f32 %v3867_v22, %v1082_v16  ;;  %v1240_v24 = vsel %vm1237_vm6, %v1238_v1, %v1239_v13  ;;  %v1211_v25 = vrot.slane %v1161_v11, 1  ;;  %v1250_v26 = vrot.slane %v1161_v11, 7 }
 0x1d1   : > { %v1433_v28 = vshll.u32 %v3902_v41, 16  ;;  %v3932_v29 = vpack.c.bf16 %v1240_v24, %v1318_v40  ;;  %v1254_v31 = vrot.slane %v1164_v53, 7  ;;  %v1303_v34 = vrot.slane %v1164_v53, 5 }
 0x1d2   : > { %v1438_v35 = vshll.u32 %v1345_v0, 16  ;;  %v1323_v36 = vsel %vm1237_vm6, %v1212_v15, %v1253_v21  ;;  %v1251_v38 = vrot.slane %v1162_v20, 7  ;;  %v1302_v39 = vrot.slane %v1162_v20, 5 }
 0x1d3   : > { %v1435_v42 = vrot.slane %v1433_v28, 1  ;;  %v1255_v43 = vsel %vm1237_vm6, %v1253_v21, %v1254_v31  ;;  %v1333_v44 = vsel %vm1237_vm6, %v1254_v31, %v1303_v34  ;;  %v1563_v46 = vrot.slane %v3902_v41, 1 }
 0x1d4   : > { %v3154_v45 = vpop.f32.mrb[12].mxu0  ;;  %v1564_v2 = vrot.slane %v1345_v0, 1  ;;  %v1322_v47 = vsel %vm1237_vm6, %v1211_v25, %v1250_v26  ;;  %v3939_v4 = vpack.c.bf16 %v1255_v43, %v1323_v36  ;;  %v1252_v48 = vsel %vm1237_vm6, %v1250_v26, %v1251_v38 }
 0x1d5   : > { %v1332_v49 = vsel %vm1237_vm6, %v1251_v38, %v1302_v39  ;;  %v1095_v50 = vpop.f32.mrb[13].mxu0  ;;  %v3943_v51 = vpack.c.bf16 %v1252_v48, %v1322_v47  ;;  %v1167_v54 = vadd.f32 %v3154_v45, %v3867_v22  ;;  %v1436_v55 = vor.u32 %v1435_v42, %v1431_v23 }
 0x1d6   : > { %v1440_v56 = vrot.slane %v1438_v35, 1  ;;  %v3155_v19 = vpop.f32.mrb[14].mxu0  ;;  %v3946_v57 = vpack.c.bf16 %v1333_v44, %v1333_v44  ;;  %v3948_v27 = vpack.c.bf16 %v1332_v49, %v1332_v49  ;;  %v1165_v60 = vadd.f32 %v3867_v22, %v1095_v50 }
 0x1d7   : > { %v3952_v61 = vadd.f32 %v3155_v19, %v3867_v22  ;;  %v1098_v62 = vpop.f32.mrb[15].mxu0  ;;  %v1214_v32 = vrot.slane %v1167_v54, 1  ;;  %v1259_v1 = vrot.slane %v1167_v54, 7  ;;  %v1565_v5 = vsel %vm626_vm1, %v1563_v46, %v1564_v2 }
 0x1d8   : > { %v1441_v3 = vsel %vm457_vm2, %v1436_v55, %v1440_v56  ;;  %v1213_v6 = vrot.slane %v1165_v60, 1  ;;  %v1256_v8 = vrot.slane %v1165_v60, 7  ;;  %v1455_v9 = vshrl.u32 %v3939_v4, 16 }
 0x1d9   : > { %1520 = vrot.lane.b32.xlu0 %v1441_v3, %s3551_s12  ;;  %v1260_v59 = vrot.slane %v3952_v61, 7  ;;  %v1189_v0 = vmul.f32 %v3917_v14, %v1167_v54  ;;  %v1190_v11 = vmul.f32 %v3917_v14, %v3952_v61  ;;  %v1166_v12 = vadd.f32 %v3867_v22, %v1098_v62  ;;  %v3976_v14 = vld [vmem:[%s4664_s3] sm:$0xff]  }
 0x1da   : > { %v1457_v15 = vshll.u32 %v3939_v4, 16  ;;  %v1325_v21 = vsel %vm1237_vm6, %v1214_v32, %v1259_v1  ;;  %v1305_v18 = vrot.slane %v3952_v61, 5  ;;  %v1462_v40 = vshll.u32 %v3946_v57, 16  ;;  %3188 = vmatprep.subr.bf16.mxu1 %v3976_v14 }
 0x1db   : > { %v1261_v16 = vsel %vm1237_vm6, %v1259_v1, %v1260_v59  ;;  %v1257_v20 = vrot.slane %v1166_v12, 7  ;;  %v1304_v23 = vrot.slane %v1166_v12, 5  ;;  %v1324_v26 = vsel %vm1237_vm6, %v1213_v6, %v1256_v8 }
 0x1dc   : > { %v3978_v53 = vpack.c.bf16 %v1261_v16, %v1325_v21  ;;  %v3158_v24 = vpop.f32.mrb[16].mxu0  ;;  %v1459_v25 = vrot.slane %v1457_v15, 1  ;;  %v1445_v34 = vshll.u32 %v3943_v51, 16  ;;  %v1450_v35 = vshll.u32 %v3948_v27, 16 }
 0x1dd   : > { %1590 = vrot.lane.b32.xlu0 %v1565_v5, %s3552_s15  ;;  %v1171_v28 = vadd.f32 %v3158_v24, %v3867_v22  ;;  %v1111_v31 = vpop.f32.mrb[17].mxu0  ;;  %v1258_v36 = vsel %vm1237_vm6, %v1256_v8, %v1257_v20  ;;  %v1464_v39 = vrot.slane %v1462_v40, 1  ;;  %v1443_v46 = vshrl.u32 %v3943_v51, 16 }
 0x1de   : > { %v1460_v38 = vor.u32 %v1459_v25, %v1455_v9  ;;  %v1169_v42 = vadd.f32 %v3867_v22, %v1111_v31  ;;  %v3159_v43 = vpop.f32.mrb[18].mxu0  ;;  %v3988_v44 = vpack.c.bf16 %v1258_v36, %v1324_v26  ;;  %v1447_v2 = vrot.slane %v1445_v34, 1 }
 0x1df   : > { %v1193_v45 = vmul.f32 %v1192_v17, %v1171_v28  ;;  %v1114_v47 = vpop.f32.mrb[19].mxu0  ;;  %v1334_v48 = vsel %vm1237_vm6, %v1257_v20, %v1304_v23  ;;  %v1452_v54 = vrot.slane %v1450_v35, 1  ;;  %v1172_v19 = vadd.f32 %v3159_v43, %v3867_v22 }
 0x1e0   : > { %v1465_v49 = vsel %vm457_vm2, %v1460_v38, %v1464_v39  ;;  %v1215_v50 = vrot.slane %v1169_v42, 1  ;;  %v1448_v56 = vor.u32 %v1447_v2, %v1443_v46  ;;  %v1170_v60 = vadd.f32 %v3867_v22, %v1114_v47 }
 0x1e1   : > { %v1195_v55 = vadd.f32 %v1193_v45, %v1189_v0  ;;  %1524 = vrot.lane.b32.xlu0 %v1465_v49, %s3551_s12  ;;  %v1262_v62 = vrot.slane %v1169_v42, 7  ;;  %v1569_v63 = vrot.slane %v3939_v4, 1  ;;  %v1570_v32 = vrot.slane %v3946_v57, 1 }
 0x1e2   : > { %v1566_v1 = vrot.slane %v3943_v51, 1  ;;  %v1453_v6 = vsel %vm457_vm2, %v1448_v56, %v1452_v54  ;;  %v1194_v8 = vmul.f32 %v1192_v17, %v1172_v19  ;;  %v1263_v9 = vrot.slane %v1170_v60, 7 }
 0x1e3   : > { %v1216_v3 = vrot.slane %v1195_v55, 1  ;;  %v1265_v5 = vrot.slane %v1195_v55, 7  ;;  %1522 = vrot.lane.b32.xlu1 %v1453_v6, %s3551_s12  ;;  %v1306_v0 = vrot.slane %v1170_v60, 5  ;;  %v1571_v12 = vsel %vm626_vm1, %v1569_v63, %v1570_v32 }
 0x1e4   : > { %v1567_v22 = vrot.slane %v3948_v27, 1  ;;  %v1299_v15 = vrot.slane %v3871_v30, 5  ;;  %v1351_v21 = vpack.c.bf16 %v1334_v48, %v1334_v48  ;;  %v4008_v57 = vadd.f32 %v1194_v8, %v1190_v11 }
 0x1e5   : > { %1594 = vrot.lane.b32.xlu0 %v1571_v12, %s3552_s15  ;;  %v1335_v16 = vsel %vm1237_vm6, %v1260_v59, %v1305_v18  ;;  %v1326_v17 = vsel %vm1237_vm6, %v1215_v50, %v1262_v62  ;;  %v1264_v40 = vsel %vm1237_vm6, %v1262_v62, %v1263_v9  ;;  %v1336_v20 = vsel %vm1237_vm6, %v1263_v9, %v1306_v0 }
 0x1e6   : > { %v1353_v23 = vpack.c.bf16 %v1335_v16, %v1335_v16  ;;  %v1298_v27 = vrot.slane %v3908_v7, 5  ;;  %v1266_v24 = vrot.slane %v4008_v57, 7  ;;  %v4019_v25 = vpack.c.bf16 %v1264_v40, %v1326_v17 }
 0x1e7   : > { %v1568_v11 = vsel %vm626_vm1, %v1566_v1, %v1567_v22  ;;  %v1327_v26 = vsel %vm1237_vm6, %v1216_v3, %v1265_v5  ;;  %v1481_v61 = vshll.u32 %v3978_v53, 16  ;;  %v1469_v18 = vshll.u32 %v3988_v44, 16 }
 0x1e8   : > { %1592 = vrot.lane.b32.xlu1 %v1568_v11, %s3552_s15  ;;  %v1486_v59 = vshll.u32 %v1353_v23, 16  ;;  %v1267_v28 = vsel %vm1237_vm6, %v1265_v5, %v1266_v24  ;;  %v4027_v31 = vpack.c.bf16 %v1336_v20, %v1336_v20  ;;  %v1479_v34 = vshrl.u32 %v3978_v53, 16 }
 0x1e9   : > { %v1474_v35 = vshll.u32 %v1351_v21, 16  ;;  %v4030_v36 = vpack.c.bf16 %v1267_v28, %v1327_v26  ;;  %v1483_v38 = vrot.slane %v1481_v61, 1  ;;  %v1467_v39 = vshrl.u32 %v3988_v44, 16 }
 0x1ea   : > { %v1471_v42 = vrot.slane %v1469_v18, 1  ;;  %v1300_v43 = vrot.slane %v3892_v52, 5  ;;  %v1488_v45 = vrot.slane %v1486_v59, 1  ;;  %v1575_v46 = vrot.slane %v3978_v53, 1 }
 0x1eb   : > { %v1576_v2 = vrot.slane %v1353_v23, 1  ;;  %v1484_v47 = vor.u32 %v1483_v38, %v1479_v34  ;;  %v1476_v49 = vrot.slane %v1474_v35, 1  ;;  %v1328_v50 = vsel %vm1237_vm6, %v1239_v13, %v1298_v27 }
 0x1ec   : > { %v1472_v48 = vor.u32 %v1471_v42, %v1467_v39  ;;  %v1572_v54 = vrot.slane %v3988_v44, 1  ;;  %v1573_v55 = vrot.slane %v1351_v21, 1  ;;  %v1339_v56 = vpack.c.bf16 %v1328_v50, %v1328_v50 }
 0x1ed   : > { %v1397_v19 = vshll.u32 %v3932_v29, 16  ;;  %v1489_v60 = vsel %vm457_vm2, %v1484_v47, %v1488_v45  ;;  %v1493_v63 = vshll.u32 %v4019_v25, 16  ;;  %v1498_v32 = vshll.u32 %v4027_v31, 16 }
 0x1ee   : > { %v1477_v62 = vsel %vm457_vm2, %v1472_v48, %v1476_v49  ;;  %v1329_v7 = vsel %vm1237_vm6, %v1242_v33, %v1299_v15  ;;  %1528 = vrot.lane.b32.xlu0 %v1489_v60, %s3551_s12  ;;  %v1409_v1 = vshll.u32 %v3882_v37, 16  ;;  %v1395_v3 = vshrl.u32 %v3932_v29, 16 }
 0x1ef   : > { %1526 = vrot.lane.b32.xlu1 %v1477_v62, %s3551_s12  ;;  %v1399_v13 = vrot.slane %v1397_v19, 1  ;;  %v1402_v5 = vshll.u32 %v1339_v56, 16  ;;  %v1491_v6 = vshrl.u32 %v4019_v25, 16  ;;  %v1495_v8 = vrot.slane %v1493_v63, 1 }
 0x1f0   : > { %v1307_v9 = vrot.slane %v4008_v57, 5  ;;  %v1577_v0 = vsel %vm626_vm1, %v1575_v46, %v1576_v2  ;;  %v1574_v30 = vsel %vm626_vm1, %v1572_v54, %v1573_v55  ;;  %v1330_v33 = vsel %vm1237_vm6, %v1245_v58, %v1300_v43 }
 0x1f1   : > { %v1400_v12 = vor.u32 %v1399_v13, %v1395_v3  ;;  %v1496_v22 = vor.u32 %v1495_v8, %v1491_v6  ;;  %v1500_v15 = vrot.slane %v1498_v32, 1  ;;  %v1421_v21 = vshll.u32 %v3914_v10, 16 }
 0x1f2   : > { %v1341_v16 = vpack.c.bf16 %v1329_v7, %v1329_v7  ;;  %1598 = vrot.lane.b32.xlu0 %v1577_v0, %s3552_s15  ;;  %v1404_v17 = vrot.slane %v1402_v5, 1  ;;  %v1343_v40 = vpack.c.bf16 %v1330_v33, %v1330_v33  ;;  %v1411_v20 = vrot.slane %v1409_v1, 1 }
 0x1f3   : > { %1596 = vrot.lane.b32.xlu1 %v1574_v30, %s3552_s15  ;;  %v1501_v57 = vsel %vm457_vm2, %v1496_v22, %v1500_v15  ;;  %v1554_v23 = vrot.slane %v3932_v29, 1  ;;  %v1555_v52 = vrot.slane %v1339_v56, 1  ;;  %v1578_v58 = vrot.slane %v4019_v25, 1  ;;  %v3432_v22 = vld [vmem:[%s4664_s3 + $0x8] sm:$0xff]  }
 0x1f4   : > { %v1337_v27 = vsel %vm1237_vm6, %v1266_v24, %v1307_v9  ;;  %v1405_v11 = vsel %vm457_vm2, %v1400_v12, %v1404_v17  ;;  %v1579_v26 = vrot.slane %v4027_v31, 1  ;;  %v1423_v61 = vrot.slane %v1421_v21, 1  ;;  %v3434_v17 = vld [vmem:[%s4664_s3 + $0x18] sm:$0xff]  }
 0x1f5   : > { %v1505_v59 = vshll.u32 %v4030_v36, 16  ;;  %v1407_v18 = vshrl.u32 %v3882_v37, 16  ;;  %v1419_v28 = vshrl.u32 %v3914_v10, 16  ;;  %v1426_v34 = vshll.u32 %v1343_v40, 16 }
 0x1f6   : > { %1514 = vrot.lane.b32.xlu0 %v1405_v11, %s3551_s12  ;;  %v1414_v35 = vshll.u32 %v1341_v16, 16  ;;  %v1357_v38 = vpack.c.bf16 %v1337_v27, %v1337_v27  ;;  %v1556_v24 = vsel %vm626_vm1, %v1554_v23, %v1555_v52  ;;  %v1580_v42 = vsel %vm626_vm1, %v1578_v58, %v1579_v26  ;;  %v3435_v52 = vld [vmem:[%s4664_s3 + $0x20] sm:$0xff]  }
 0x1f7   : > { %1530 = vrot.lane.b32.xlu1 %v1501_v57, %s3551_s12  ;;  %v1412_v39 = vor.u32 %v1411_v20, %v1407_v18  ;;  %v1424_v31 = vor.u32 %v1423_v61, %v1419_v28  ;;  %v1507_v43 = vrot.slane %v1505_v59, 1  ;;  %v1428_v45 = vrot.slane %v1426_v34, 1  ;;  %v3437_v28 = vld [vmem:[%s4664_s3 + $0x60] sm:$0xff]  }
 0x1f8   : > { %v1416_v46 = vrot.slane %v1414_v35, 1  ;;  %v1503_v2 = vshrl.u32 %v4030_v36, 16  ;;  %v1510_v47 = vshll.u32 %v1357_v38, 16  ;;  %v1557_v48 = vrot.slane %v3882_v37, 1 }
 0x1f9   : > { %v1429_v49 = vsel %vm457_vm2, %v1424_v31, %v1428_v45  ;;  %v1558_v55 = vrot.slane %v1341_v16, 1  ;;  %v1560_v62 = vrot.slane %v3914_v10, 1  ;;  %v1561_v63 = vrot.slane %v1343_v40, 1  ;;  %v3440_v45 = vld [vmem:[%s4664_s3 + $0x78] sm:$0xff]  }
 0x1fa   : > { %1584 = vrot.lane.b32.xlu0 %v1556_v24, %s3552_s15  ;;  %v1417_v50 = vsel %vm457_vm2, %v1412_v39, %v1416_v46  ;;  %v1508_v54 = vor.u32 %v1507_v43, %v1503_v2  ;;  %v1512_v56 = vrot.slane %v1510_v47, 1  ;;  %v1581_v7 = vrot.slane %v4030_v36, 1  ;;  %v3442_v46 = vld [vmem:[%s4664_s3 + $0x88] sm:$0xff]  }
 0x1fb   : > { %1600 = vrot.lane.b32.xlu1 %v1580_v42, %s3552_s15  ;;  %v1559_v60 = vsel %vm626_vm1, %v1557_v48, %v1558_v55  ;;  %v1562_v32 = vsel %vm626_vm1, %v1560_v62, %v1561_v63  ;;  %v1582_v13 = vrot.slane %v1357_v38, 1  ;;  %v3438_v38 = vld [vmem:[%s4664_s3 + $0x68] sm:$0xff]   ;;  %v4204_v62 = vld [vmem:[%s4665_s4] ss:$0 sm:$0xff] }
 0x1fc   : > { %v1513_v19 = vsel %vm457_vm2, %v1508_v54, %v1512_v56  ;;  %v3443_v54 = vld [vmem:[%s4666_s5] sm:$0xff]  }
 0x1fd   : > { %v1583_v1 = vsel %vm626_vm1, %v1581_v7, %v1582_v13 }
 0x1fe   : > { %1518 = vrot.lane.b32.xlu0 %v1429_v49, %s3551_s12 }
 0x1ff   : > { %1516 = vrot.lane.b32.xlu1 %v1417_v50, %s3551_s12 }
 0x202   : > { %1532 = vrot.lane.b32.xlu0 %v1513_v19, %s3551_s12  ;;  %s3553_s12 = smov 108  }
 0x203   : > { %1586 = vrot.lane.b32.xlu1 %v1559_v60, %s3552_s15  ;;  %v3444_v60 = vld [vmem:[%s4666_s5 + $0x8] sm:$0xff]  }
 0x207   : > { %1588 = vrot.lane.b32.xlu1 %v1562_v32, %s3552_s15 }
 0x20b   : > { %1602 = vrot.lane.b32.xlu1 %v1583_v1, %s3552_s15  ;;  %s2893_s15 = sshll.u32 %s4680_s25, 5 }
 0x20c   : > { %s314_s16 = sadd.s32 %s2893_s15, %s2892_s14 }
 0x20d   : > { %s2894_s17 = sshll.u32 %s314_s16, 3 }
 0x20e   : > { %s4580_s24 = scalar_lea.vmem %s4668_s7, %s2894_s17 }
 0x24b   : > { %v1521_v3 = vpop.permute.xlu0 %1520 }
 0x24c   : > { %v1612_v5 = vsel %vm1604_vm7, %v3902_v41, %v1521_v3 }
 0x24f   : > { %v1591_v6 = vpop.permute.xlu0 %1590 }
 0x250   : > { %v4095_v8 = vsel %vm1625_vm8, %v1612_v5, %v1591_v6 }
 0x251   : > { %3176 = vmatprep.mubr.msk.bf16.mxu1 %vm1682_vm9, %v4095_v8 }
 0x253   : > { %v1525_v9 = vpop.permute.xlu0 %1524 }
 0x254   : > { %v1616_v41 = vsel %vm1604_vm7, %v3939_v4, %v1525_v9 }
 0x255   : > { %v1523_v0 = vpop.permute.xlu1 %1522 }
 0x256   : > { %v1614_v33 = vsel %vm1604_vm7, %v3943_v51, %v1523_v0  ;;  %v3433_v51 = vld [vmem:[%s4664_s3 + $0x10] sm:$0xff]  }
 0x257   : > { %v1595_v30 = vpop.permute.xlu0 %1594 }
 0x258   : > { %v4110_v21 = vsel %vm1625_vm8, %v1616_v41, %v1595_v30 }
 0x25a   : > { %v1593_v12 = vpop.permute.xlu1 %1592 }
 0x25b   : > { %v4107_v15 = vsel %vm1625_vm8, %v1614_v33, %v1593_v12 }
 0x25c   : > { %3177 = vmatmul.mubr.msk.bf16.vlgmr.msra.gmra.mrb[0].mxu1 %vm1682_vm9, %v4107_v15 }
 0x25d   : > { %3189 = vmatpush3.bf16.msra.mxu1 %v3976_v14  ;;  %3180 = vmatprep.mubr.msk.bf16.mxu1 %vm1682_vm9, %v4110_v21 }
 0x25e   : > { %3190 = vmatprep.subr.bf16.mxu1 %v3432_v22 }
 0x260   : > { %v1529_v4 = vpop.permute.xlu0 %1528 }
 0x261   : > { %v1527_v16 = vpop.permute.xlu1 %1526  ;;  %3191 = vmatpush3.bf16.msra.mxu1 %v3432_v22  ;;  %v1620_v20 = vsel %vm1604_vm7, %v3978_v53, %v1529_v4  ;;  %v3436_v53 = vld [vmem:[%s4664_s3 + $0x28] sm:$0xff]  }
 0x262   : > { %3192 = vmatprep.subr.bf16.mxu1 %v3433_v51  ;;  %v1618_v57 = vsel %vm1604_vm7, %v3988_v44, %v1527_v16 }
 0x264   : > { %v1599_v14 = vpop.permute.xlu0 %1598 }
 0x265   : > { %v1597_v40 = vpop.permute.xlu1 %1596  ;;  %3193 = vmatpush3.bf16.msra.mxu1 %v3433_v51  ;;  %v1641_v58 = vsel %vm1625_vm8, %v1620_v20, %v1599_v14 }
 0x266   : > { %v1639_v23 = vsel %vm1625_vm8, %v1618_v57, %v1597_v40  ;;  %3194 = vmatprep.subr.bf16.mxu1 %v3434_v17 }
 0x267   : > { %3181 = vmatmul.mubr.msk.bf16.gmra.mrb[4].mxu1 %vm1682_vm9, %v1639_v23 }
 0x268   : > { %3184 = vmatprep.mubr.msk.bf16.mxu1 %vm1682_vm9, %v1641_v58  ;;  %v1515_v44 = vpop.permute.xlu0 %1514 }
 0x269   : > { %v1531_v27 = vpop.permute.xlu1 %1530  ;;  %3195 = vmatpush3.bf16.msra.mxu1 %v3434_v17  ;;  %v1606_v59 = vsel %vm1604_vm7, %v3932_v29, %v1515_v44 }
 0x26a   : > { %3196 = vmatprep.subr.bf16.mxu1 %v3435_v52  ;;  %v1622_v11 = vsel %vm1604_vm7, %v4019_v25, %v1531_v27 }
 0x26c   : > { %v1585_v26 = vpop.permute.xlu0 %1584 }
 0x26d   : > { %v1601_v61 = vpop.permute.xlu1 %1600  ;;  %3197 = vmatpush3.bf16.msra.mxu1 %v3435_v52  ;;  %v1627_v34 = vsel %vm1625_vm8, %v1606_v59, %v1585_v26 }
 0x26e   : > { %v1643_v18 = vsel %vm1625_vm8, %v1622_v11, %v1601_v61  ;;  %3198 = vmatprep.subr.bf16.mxu1 %v3436_v53 }
 0x26f   : > { %3185 = vmatmul.mubr.msk.bf16.gmra.mrb[8].mxu1 %vm1682_vm9, %v1643_v18 }
 0x270   : > { %3200 = vmatprep.mubr.msk.bf16.mxu1 %vm1682_vm9, %v1627_v34  ;;  %v1519_v39 = vpop.permute.xlu0 %1518 }
 0x271   : > { %v1517_v25 = vpop.permute.xlu1 %1516  ;;  %3199 = vmatpush3.bf16.msra.mxu1 %v3436_v53  ;;  %v1610_v42 = vsel %vm1604_vm7, %v3914_v10, %v1519_v39  ;;  %v3441_v10 = vld [vmem:[%s4664_s3 + $0x80] sm:$0xff]  }
 0x272   : > { %3216 = vmatprep.subr.bf16.mxu1 %v3437_v28  ;;  %v1608_v35 = vsel %vm1604_vm7, %v3882_v37, %v1517_v25  ;;  %v3439_v37 = vld [vmem:[%s4664_s3 + $0x70] sm:$0xff]  }
 0x274   : > { %v1533_v2 = vpop.permute.xlu0 %1532 }
 0x275   : > { %v1587_v29 = vpop.permute.xlu1 %1586  ;;  %v1624_v48 = vsel %vm1604_vm7, %v4030_v36, %v1533_v2 }
 0x276   : > { %v1629_v24 = vsel %vm1625_vm8, %v1608_v35, %v1587_v29 }
 0x277   : > { %3172 = vmatprep.mubr.msk.bf16.mxu0 %vm1682_vm9, %v1629_v24  ;;  %3201 = vmatmul.mubr.msk.bf16.vlgmr.msra.gmra.mrb[12].mxu1 %vm1682_vm9, %v1629_v24 }
 0x278   : > { %3217 = vmatpush3.bf16.msra.mxu1 %v3437_v28 }
 0x279   : > { %v1589_v31 = vpop.permute.xlu1 %1588  ;;  %3218 = vmatprep.subr.bf16.mxu1 %v3438_v38 }
 0x27a   : > { %v1631_v43 = vsel %vm1625_vm8, %v1610_v42, %v1589_v31 }
 0x27b   : > { %3173 = vmatmul.mubr.msk.bf16.vlgmr.msra.gmra.mrb[20].mxu0 %vm1682_vm9, %v1631_v43  ;;  %3204 = vmatprep.mubr.msk.bf16.mxu1 %vm1682_vm9, %v1631_v43 }
 0x27c   : > { %3219 = vmatpush3.bf16.msra.mxu1 %v3438_v38 }
 0x27d   : > { %3220 = vmatprep.subr.bf16.mxu1 %v3439_v37  ;;  %v1603_v47 = vpop.permute.xlu1 %1602 }
 0x27e   : > { %v1645_v49 = vsel %vm1625_vm8, %v1624_v48, %v1603_v47 }
 0x27f   : > { %3205 = vmatmul.mubr.msk.bf16.gmra.mrb[0].mxu1 %vm1682_vm9, %v4095_v8 }
 0x280   : > { %3208 = vmatprep.mubr.msk.bf16.mxu1 %vm1682_vm9, %v4107_v15  ;;  %3221 = vmatpush3.bf16.msra.mxu1 %v3439_v37 }
 0x281   : > { %3222 = vmatprep.subr.bf16.mxu1 %v3440_v45 }
 0x284   : > { %3223 = vmatpush3.bf16.msra.mxu1 %v3440_v45 }
 0x285   : > { %3224 = vmatprep.subr.bf16.mxu1 %v3441_v10 }
 0x287   : > { %3209 = vmatmul.mubr.msk.bf16.gmra.mrb[4].mxu1 %vm1682_vm9, %v4110_v21 }
 0x288   : > { %3212 = vmatprep.mubr.msk.bf16.mxu1 %vm1682_vm9, %v1639_v23  ;;  %3225 = vmatpush3.bf16.msra.mxu1 %v3441_v10 }
 0x289   : > { %3226 = vmatprep.subr.bf16.mxu1 %v3442_v46 }
 0x28c   : > { %3227 = vmatpush3.bf16.msra.mxu1 %v3442_v46 }
 0x28d   : > { %3244 = vmatprep.subr.bf16.mxu1 %v3443_v54 }
 0x28f   : > { %3213 = vmatmul.mubr.msk.bf16.gmra.mrb[8].mxu1 %vm1682_vm9, %v1641_v58 }
 0x290   : > { %3228 = vmatprep.mubr.msk.bf16.mxu1 %vm1682_vm9, %v1631_v43 }
 0x297   : > { %3229 = vmatmul.mubr.msk.bf16.vlgmr.msra.gmra.mrb[12].mxu1 %vm1682_vm9, %v4095_v8 }
 0x298   : > { %3232 = vmatprep.mubr.msk.bf16.mxu1 %vm1682_vm9, %v4107_v15  ;;  %3245 = vmatpush3.bf16.msra.mxu1 %v3443_v54 }
 0x299   : > { %3246 = vmatprep.subr.bf16.mxu1 %v3444_v60 }
 0x29c   : > { %3247 = vmatpush3.bf16.msra.mxu1 %v3444_v60 }
 0x29f   : > { %3233 = vmatmul.mubr.msk.bf16.gmra.mrb[0].mxu1 %vm1682_vm9, %v4110_v21 }
 0x2a0   : > { %3236 = vmatprep.mubr.msk.bf16.mxu1 %vm1682_vm9, %v1639_v23 }
 0x2a7   : > { %3237 = vmatmul.mubr.msk.bf16.gmra.mrb[4].mxu1 %vm1682_vm9, %v1641_v58 }
 0x2a8   : > { %3240 = vmatprep.mubr.msk.bf16.mxu1 %vm1682_vm9, %v1643_v18 }
 0x2af   : > { %3241 = vmatmul.mubr.msk.bf16.gmra.mrb[8].mxu1 %vm1682_vm9, %v1645_v49 }
 0x34e   : > { %v3174_v50 = vpop.f32.mrb[20].mxu0 }
 0x34f   : > { %v1733_v55 = vpop.f32.mrb[21].mxu0 }
 0x350   : > { %v3175_v56 = vpop.f32.mrb[22].mxu0 }
 0x351   : > { %v1736_v19 = vpop.f32.mrb[23].mxu0 }
 0x36a   : > { %v3230_v36 = vpop.f32.mrb[12].mxu1 }
 0x36b   : > { %v3276_v63 = vadd.f32 %v3230_v36, %v3174_v50  ;;  %v2003_v32 = vpop.f32.mrb[13].mxu1 }
 0x36c   : > { %v3277_v7 = vadd.f32 %v2003_v32, %v1733_v55  ;;  %v3231_v13 = vpop.f32.mrb[14].mxu1 }
 0x36d   : > { %v2091_v1 = vadd.f32 %v3276_v63, %v4204_v62  ;;  %v3278_v3 = vadd.f32 %v3231_v13, %v3175_v56  ;;  %v2006_v5 = vpop.f32.mrb[15].mxu1 }
 0x36e   : > { %v2089_v6 = vadd.f32 %v3277_v7, %v4204_v62  ;;  %v3279_v8 = vadd.f32 %v2006_v5, %v1736_v19 }
 0x36f   : > { %v4208_v9 = vmul.f32 0.70710677, %v2091_v1  ;;  %v2092_v0 = vadd.f32 %v3278_v3, %v4204_v62  ;;  %2709 = vrot.lane.b32.xlu0 %v2091_v1, %s3553_s12  ;;  %v4261_v45 = vmul.f32 0.5, %v2091_v1 }
 0x370   : > { %v4212_v30 = vmul.f32 0.70710677, %v2089_v6  ;;  %v4215_v33 = vadd.f32 %v3279_v8, %v4204_v62  ;;  %v4266_v47 = vmul.f32 0.5, %v2089_v6 }
 0x371   : > { %v2139_v12 = vand.u32 2147483647, %v4208_v9  ;;  %v4218_v22 = vmul.f32 0.70710677, %v2092_v0  ;;  %2711 = vrot.lane.b32.xlu1 %v2092_v0, %s3553_s12  ;;  %v4270_v54 = vmul.f32 0.5, %v2092_v0  ;;  %vm2459_vm10 = vcmp.lt.f32.partialorder %v4208_v9, 0.0 }
 0x372   : > { %v2137_v41 = vand.u32 2147483647, %v4212_v30  ;;  %v4223_v15 = vmul.f32 0.70710677, %v4215_v33  ;;  %v3234_v16 = vpop.f32.mrb[0].mxu1  ;;  %vm2457_vm11 = vcmp.lt.f32.partialorder %v4212_v30, 0.0 }
 0x373   : > { %v2155_v21 = vmul.f32 0.3275911, %v2139_v12  ;;  %v2363_v51 = vmul.f32 %v2139_v12, %v2139_v12  ;;  %v2140_v4 = vand.u32 2147483647, %v4218_v22  ;;  %2705 = vrot.lane.b32.xlu0 %v2089_v6, %s3553_s12  ;;  %v2019_v14 = vpop.f32.mrb[1].mxu1  ;;  %v4231_v18 = vadd.f32 %v3234_v16, %v4204_v62 }
 0x374   : > { %v2153_v17 = vmul.f32 0.3275911, %v2137_v41  ;;  %v2138_v57 = vand.u32 2147483647, %v4223_v15  ;;  %v2361_v20 = vmul.f32 %v2137_v41, %v2137_v41  ;;  %v3235_v52 = vpop.f32.mrb[2].mxu1  ;;  %v4234_v28 = vadd.f32 %v4204_v62, %v2019_v14 }
 0x375   : > { %v2171_v40 = vadd.f32 1.0, %v2155_v21  ;;  %v2156_v23 = vmul.f32 0.3275911, %v2140_v4  ;;  %2707 = vrot.lane.b32.xlu1 %v4215_v33, %s3553_s12  ;;  %v2022_v27 = vpop.f32.mrb[3].mxu1  ;;  %v2379_v53 = vsub.f32 0.0, %v2363_v51  ;;  %v2364_v26 = vmul.f32 %v2140_v4, %v2140_v4 }
 0x376   : > { %v2169_v58 = vadd.f32 1.0, %v2153_v17  ;;  %v2154_v44 = vmul.f32 0.3275911, %v2138_v57  ;;  %v2377_v61 = vsub.f32 0.0, %v2361_v20  ;;  %v2362_v34 = vmul.f32 %v2138_v57, %v2138_v57 }
 0x377   : > { %3445 = vrcp.f32 %v2171_v40  ;;  %v2172_v11 = vadd.f32 1.0, %v2156_v23  ;;  %v4237_v25 = vadd.f32 %v3235_v52, %v4204_v62  ;;  %v2397_v29 = vmul.f32 1.442695, %v2379_v53  ;;  %2717 = vrot.lane.b32.xlu0 %v4231_v18, %s3553_s12 }
 0x378   : > { %3447 = vrcp.f32 %v2169_v58  ;;  %v2170_v59 = vadd.f32 1.0, %v2154_v44  ;;  %v4242_v38 = vmul.f32 0.70710677, %v4231_v18  ;;  %v4245_v39 = vadd.f32 %v4204_v62, %v2022_v27 }
 0x379   : > { %3449 = vrcp.f32 %v2172_v11  ;;  %v2380_v42 = vsub.f32 0.0, %v2364_v26  ;;  %v4252_v31 = vmul.f32 0.70710677, %v4234_v28  ;;  %v4255_v37 = vmul.f32 0.70710677, %v4237_v25  ;;  %2719 = vrot.lane.b32.xlu1 %v4237_v25, %s3553_s12 }
 0x37a   : > { %v4239_v35 = vpop.f32.mrb[4].mxu1  ;;  %v2393_v10 = vmul.f32 1.442695, %v2377_v61  ;;  %3451 = vrcp.f32 %v2170_v59  ;;  %v2143_v46 = vand.u32 2147483647, %v4242_v38  ;;  %v2378_v48 = vsub.f32 0.0, %v2362_v34 }
 0x37b   : > { %v4249_v24 = vpop.f32.mrb[5].mxu1  ;;  %v2141_v49 = vand.u32 2147483647, %v4252_v31  ;;  %v2144_v50 = vand.u32 2147483647, %v4255_v37  ;;  %2713 = vrot.lane.b32.xlu0 %v4234_v28, %s3553_s12  ;;  %3453 = vpow2.f32 %v2397_v29  ;;  %v4303_v59 = vadd.f32 %v4239_v35, %v4204_v62 }
 0x37c   : > { %v4259_v43 = vpop.f32.mrb[6].mxu1  ;;  %v2159_v55 = vmul.f32 0.3275911, %v2143_v46  ;;  %v2367_v56 = vmul.f32 %v2143_v46, %v2143_v46  ;;  %v4273_v19 = vmul.f32 0.70710677, %v4245_v39  ;;  %3455 = vpow2.f32 %v2393_v10 }
 0x37d   : > { %v4264_v2 = vpop.f32.mrb[7].mxu1  ;;  %v2399_v60 = vmul.f32 1.442695, %v2380_v42  ;;  %v2157_v36 = vmul.f32 0.3275911, %v2141_v49  ;;  %2715 = vrot.lane.b32.xlu1 %v4245_v39, %s3553_s12  ;;  %v2365_v1 = vmul.f32 %v2141_v49, %v2141_v49  ;;  %v2368_v51 = vmul.f32 %v2144_v50, %v2144_v50 }
 0x37e   : > { %v2160_v63 = vmul.f32 0.3275911, %v2144_v50  ;;  %v2175_v7 = vadd.f32 1.0, %v2159_v55  ;;  %v2383_v13 = vsub.f32 0.0, %v2367_v56  ;;  %v2142_v3 = vand.u32 2147483647, %v4273_v19 }
 0x37f   : > { %v2395_v8 = vmul.f32 1.442695, %v2378_v48  ;;  %v2173_v0 = vadd.f32 1.0, %v2157_v36  ;;  %v2381_v20 = vsub.f32 0.0, %v2365_v1  ;;  %v2384_v61 = vsub.f32 0.0, %v2368_v51  ;;  %2725 = vrot.lane.b32.xlu0 %v4303_v59, %s3553_s12 }
 0x380   : > { %3457 = vrcp.f32 %v2175_v7  ;;  %v2176_v21 = vadd.f32 1.0, %v2160_v63  ;;  %v2405_v17 = vmul.f32 1.442695, %v2383_v13  ;;  %v2158_v57 = vmul.f32 0.3275911, %v2142_v3 }
 0x381   : > { %v4279_v32 = vpop.eup %3445  ;;  %3459 = vrcp.f32 %v2173_v0  ;;  %v2366_v23 = vmul.f32 %v2142_v3, %v2142_v3  ;;  %v2401_v46 = vmul.f32 1.442695, %v2381_v20  ;;  %v4311_v35 = vmul.f32 0.70710677, %v4303_v59 }
 0x382   : > { %v4282_v5 = vpop.eup %3447  ;;  %v2219_v6 = vmul.f32 1.0614054, %v4279_v32  ;;  %v4285_v12 = vpop.f32.mrb[8].mxu1  ;;  %3461 = vpow2.f32 %v2399_v60  ;;  %v2174_v27 = vadd.f32 1.0, %v2158_v57  ;;  %v2407_v36 = vmul.f32 1.442695, %v2384_v61 }
 0x383   : > { %v2217_v41 = vmul.f32 1.0614054, %v4282_v5  ;;  %v4288_v4 = vpop.f32.mrb[9].mxu1  ;;  %v4290_v14 = vpop.eup %3449  ;;  %3463 = vpow2.f32 %v2395_v8  ;;  %v2382_v48 = vsub.f32 0.0, %v2366_v23  ;;  %v4316_v63 = vadd.f32 %v4204_v62, %v4249_v24 }
 0x384   : > { %v2235_v16 = vadd.f32 -1.4531521, %v2219_v6  ;;  %v4292_v52 = vpop.f32.mrb[10].mxu1  ;;  %v2220_v44 = vmul.f32 1.0614054, %v4290_v14  ;;  %v4298_v11 = vpop.eup %3451  ;;  %3465 = vrcp.f32 %v2176_v21  ;;  %v4320_v7 = vadd.f32 %v4259_v43, %v4204_v62 }
 0x385   : > { %v2233_v40 = vadd.f32 -1.4531521, %v2217_v41  ;;  %v4296_v53 = vpop.f32.mrb[11].mxu1  ;;  %v2218_v42 = vmul.f32 1.0614054, %v4298_v11  ;;  %3467 = vpow2.f32 %v2405_v17  ;;  %v3454_v49 = vpop.eup %3453  ;;  %v4329_v21 = vmul.f32 0.5, %v4215_v33  ;;  %2721 = vrot.lane.b32.xlu0 %v4316_v63, %s3553_s12 }
 0x386   : > { %v2251_v58 = vmul.f32 %v4279_v32, %v2235_v16  ;;  %v2236_v29 = vadd.f32 -1.4531521, %v2220_v44  ;;  %3469 = vrcp.f32 %v2174_v27  ;;  %v3456_v13 = vpop.eup %3455  ;;  %v4324_v8 = vand.u32 2147483647, %v4311_v35  ;;  %2727 = vrot.lane.b32.xlu1 %v4320_v7, %s3553_s12 }
 0x387   : > { %v2249_v26 = vmul.f32 %v4282_v5, %v2233_v40  ;;  %v2234_v56 = vadd.f32 -1.4531521, %v2218_v42  ;;  %3471 = vpow2.f32 %v2401_v46  ;;  %v2403_v24 = vmul.f32 1.442695, %v2382_v48 }
 0x388   : > { %v2267_v34 = vadd.f32 1.4214138, %v2251_v58  ;;  %v2252_v55 = vmul.f32 %v4290_v14, %v2236_v29  ;;  %3473 = vpow2.f32 %v2407_v36  ;;  %v2163_v23 = vmul.f32 0.3275911, %v4324_v8 }
 0x389   : > { %v2265_v10 = vadd.f32 1.4214138, %v2249_v26  ;;  %v2250_v6 = vmul.f32 %v4298_v11, %v2234_v56  ;;  %3475 = vpow2.f32 %v2403_v24  ;;  %vm2460_vm12 = vcmp.lt.f32.partialorder %v4218_v22, 0.0 }
 0x38a   : > { %v2283_v50 = vmul.f32 %v4279_v32, %v2267_v34  ;;  %v2268_v3 = vadd.f32 1.4214138, %v2252_v55  ;;  %v4326_v0 = vpop.eup %3457  ;;  %vm2458_vm13 = vcmp.lt.f32.partialorder %v4223_v15, 0.0  ;;  %vm2463_vm14 = vcmp.lt.f32.partialorder %v4242_v38, 0.0 }
 0x38b   : > { %v2281_v60 = vmul.f32 %v4282_v5, %v2265_v10  ;;  %v4335_v43 = vpop.eup %3459  ;;  %v2266_v17 = vadd.f32 1.4214138, %v2250_v6  ;;  %v2223_v57 = vmul.f32 1.0614054, %v4326_v0  ;;  %v2179_v10 = vadd.f32 1.0, %v2163_v23 }
 0x38c   : > { %v2299_v1 = vadd.f32 -0.28449672, %v2283_v50  ;;  %v2284_v16 = vmul.f32 %v4290_v14, %v2268_v3  ;;  %v3462_v40 = vpop.eup %3461  ;;  %v2221_v20 = vmul.f32 1.0614054, %v4335_v43  ;;  %v4419_v38 = vmul.f32 0.70710677, %v4320_v7 }
 0x38d   : > { %v2297_v41 = vadd.f32 -0.28449672, %v2281_v60  ;;  %v3464_v58 = vpop.eup %3463  ;;  %v2282_v26 = vmul.f32 %v4298_v11, %v2266_v17  ;;  %v2239_v61 = vadd.f32 -1.4531521, %v2223_v57  ;;  %3477 = vrcp.f32 %v2179_v10 }
 0x38e   : > { %v2315_v51 = vmul.f32 %v4279_v32, %v2299_v1  ;;  %v2300_v27 = vadd.f32 -0.28449672, %v2284_v16  ;;  %v4344_v34 = vpop.eup %3465  ;;  %v2237_v42 = vadd.f32 -1.4531521, %v2221_v20  ;;  %vm2464_vm15 = vcmp.lt.f32.partialorder %v4255_v37, 0.0 }
 0x38f   : > { %v2313_v33 = vmul.f32 %v4282_v5, %v2297_v41  ;;  %v4347_v46 = vpop.eup %3467  ;;  %v2298_v55 = vadd.f32 -0.28449672, %v2282_v26  ;;  %v2255_v56 = vmul.f32 %v4326_v0, %v2239_v61  ;;  %v2224_v3 = vmul.f32 1.0614054, %v4344_v34 }
 0x390   : > { %v2331_v44 = vadd.f32 0.2548296, %v2315_v51  ;;  %v2316_v50 = vmul.f32 %v4290_v14, %v2300_v27  ;;  %v4353_v60 = vpop.eup %3469  ;;  %v2253_v1 = vmul.f32 %v4335_v43, %v2237_v42  ;;  %v4432_v37 = vadd.f32 %v4285_v12, %v4204_v62 }
 0x391   : > { %v2329_v29 = vadd.f32 0.2548296, %v2313_v33  ;;  %v2271_v24 = vadd.f32 1.4214138, %v2255_v56  ;;  %v2240_v17 = vadd.f32 -1.4531521, %v2224_v3  ;;  %v4447_v12 = vadd.f32 %v4204_v62, %v4288_v4 }
 0x392   : > { %v2347_v48 = vmul.f32 %v4279_v32, %v2331_v44  ;;  %v2332_v41 = vadd.f32 0.2548296, %v2316_v50  ;;  %v2314_v32 = vmul.f32 %v4298_v11, %v2298_v55  ;;  %v2269_v16 = vadd.f32 1.4214138, %v2253_v1  ;;  %v4363_v44 = vpop.eup %3471 }
 0x393   : > { %v2345_v36 = vmul.f32 %v4282_v5, %v2329_v29  ;;  %v2222_v57 = vmul.f32 1.0614054, %v4353_v60  ;;  %v2287_v23 = vmul.f32 %v4326_v0, %v2271_v24  ;;  %v2371_v24 = vmul.f32 %v4324_v8, %v4324_v8  ;;  %2729 = vrot.lane.b32.xlu0 %v4447_v12, %s3553_s12 }
 0x394   : > { %v2427_v6 = vmul.f32 %v3454_v49, %v2347_v48  ;;  %v2348_v5 = vmul.f32 %v4290_v14, %v2332_v41  ;;  %v2330_v20 = vadd.f32 0.2548296, %v2314_v32  ;;  %v2285_v27 = vmul.f32 %v4335_v43, %v2269_v16  ;;  %v3474_v48 = vpop.eup %3473 }
 0x395   : > { %v2425_v51 = vmul.f32 %v3456_v13, %v2345_v36  ;;  %v2256_v13 = vmul.f32 %v4344_v34, %v2240_v17  ;;  %v2238_v26 = vadd.f32 -1.4531521, %v2222_v57  ;;  %v2303_v10 = vadd.f32 -0.28449672, %v2287_v23  ;;  %v3476_v41 = vpop.eup %3475 }
 0x396   : > { %v2443_v33 = vsub.f32 1.0, %v2427_v6  ;;  %v2428_v29 = vmul.f32 %v3462_v40, %v2348_v5  ;;  %v2346_v42 = vmul.f32 %v4298_v11, %v2330_v20  ;;  %v2301_v50 = vadd.f32 -0.28449672, %v2285_v27 }
 0x397   : > { %v2441_v49 = vsub.f32 1.0, %v2425_v51  ;;  %v2272_v55 = vadd.f32 1.4214138, %v2256_v13  ;;  %v2254_v56 = vmul.f32 %v4353_v60, %v2238_v26  ;;  %v2319_v6 = vmul.f32 %v4326_v0, %v2303_v10  ;;  %v4378_v9 = vpop.eup %3477  ;;  %2733 = vrot.lane.b32.xlu0 %v4432_v37, %s3553_s12 }
 0x398   : > { %v2475_v61 = vsub.f32 0.0, %v2443_v33  ;;  %v2444_v1 = vsub.f32 1.0, %v2428_v29  ;;  %v2426_v3 = vmul.f32 %v3464_v58, %v2346_v42  ;;  %v4397_v42 = vmul.f32 0.70710677, %v4316_v63 }
 0x399   : > { %v2473_v14 = vsub.f32 0.0, %v2441_v49  ;;  %v2288_v11 = vmul.f32 %v4344_v34, %v2272_v55  ;;  %v2335_v57 = vadd.f32 0.2548296, %v2319_v6  ;;  %v2270_v20 = vadd.f32 1.4214138, %v2254_v56 }
 0x39a   : > { %v2491_v36 = vsel %vm2459_vm10, %v2475_v61, %v2443_v33  ;;  %v2476_v16 = vsub.f32 0.0, %v2444_v1  ;;  %v2442_v17 = vsub.f32 1.0, %v2426_v3  ;;  %v2317_v33 = vmul.f32 %v4335_v43, %v2301_v50 }
 0x39b   : > { %v2507_v32 = vadd.f32 1.0, %v2491_v36  ;;  %v2489_v40 = vsel %vm2457_vm11, %v2473_v14, %v2441_v49  ;;  %v2304_v5 = vadd.f32 -0.28449672, %v2288_v11  ;;  %v2351_v49 = vmul.f32 %v4326_v0, %v2335_v57 }
 0x39c   : > { %v2505_v51 = vadd.f32 1.0, %v2489_v40  ;;  %v2492_v23 = vsel %vm2460_vm12, %v2476_v16, %v2444_v1  ;;  %v2474_v8 = vsub.f32 0.0, %v2442_v17  ;;  %v2286_v26 = vmul.f32 %v4353_v60, %v2270_v20 }
 0x39d   : > { %v4381_v58 = vmul.f32 %v2507_v32, %v4261_v45  ;;  %v2508_v27 = vadd.f32 1.0, %v2492_v23  ;;  %v2320_v13 = vmul.f32 %v4344_v34, %v2304_v5  ;;  %v2387_v45 = vsub.f32 0.0, %v2371_v24 }
 0x39e   : > { %v4385_v30 = vmul.f32 %v2505_v51, %v4266_v47  ;;  %v2490_v61 = vsel %vm2458_vm13, %v2474_v8, %v2442_v17  ;;  %v2431_v29 = vmul.f32 %v4347_v46, %v2351_v49  ;;  %v2227_v47 = vmul.f32 1.0614054, %v4378_v9 }
 0x39f   : > { %v4400_v22 = vmul.f32 %v2508_v27, %v4270_v54  ;;  %v2506_v0 = vadd.f32 1.0, %v2490_v61  ;;  %v2333_v10 = vadd.f32 0.2548296, %v2317_v33  ;;  %v2336_v14 = vadd.f32 0.2548296, %v2320_v13 }
 0x3a0   : > { %v2447_v50 = vsub.f32 1.0, %v2431_v29  ;;  %v2302_v55 = vadd.f32 -0.28449672, %v2286_v26  ;;  %v2243_v56 = vadd.f32 -1.4531521, %v2227_v47  ;;  %v2111_v40 = vmul.f32 0.5, %v4231_v18 }
 0x3a1   : > { %v2538_v15 = vpack.c.bf16 %v4400_v22, %v4381_v58  ;;  %v4405_v36 = vmul.f32 %v2506_v0, %v4329_v21  ;;  %v2352_v46 = vmul.f32 %v4344_v34, %v2336_v14  ;;  %v2413_v1 = vmul.f32 1.442695, %v2387_v45 }
 0x3a2   : > { %v2479_v3 = vsub.f32 0.0, %v2447_v50  ;;  %v2318_v6 = vmul.f32 %v4353_v60, %v2302_v55  ;;  %v2259_v54 = vmul.f32 %v4378_v9, %v2243_v56  ;;  %v2145_v32 = vand.u32 2147483647, %v4397_v42 }
 0x3a3   : > { %v2432_v11 = vmul.f32 %v3474_v48, %v2352_v46  ;;  %v2349_v34 = vmul.f32 %v4335_v43, %v2333_v10  ;;  %3479 = vpow2.f32 %v2413_v1  ;;  %v2148_v27 = vand.u32 2147483647, %v4419_v38 }
 0x3a4   : > { %v2495_v24 = vsel %vm2463_vm14, %v2479_v3, %v2447_v50  ;;  %v2334_v51 = vadd.f32 0.2548296, %v2318_v6  ;;  %v2275_v16 = vadd.f32 1.4214138, %v2259_v54  ;;  %v2161_v21 = vmul.f32 0.3275911, %v2145_v32 }
 0x3a5   : > { %v2511_v17 = vadd.f32 1.0, %v2495_v24  ;;  %v2448_v57 = vsub.f32 1.0, %v2432_v11  ;;  %v2429_v43 = vmul.f32 %v4363_v44, %v2349_v34  ;;  %v4428_v45 = vadd.f32 %v4204_v62, %v4264_v2 }
 0x3a6   : > { %v2350_v33 = vmul.f32 %v4353_v60, %v2334_v51  ;;  %v2291_v5 = vmul.f32 %v4378_v9, %v2275_v16  ;;  %v2177_v20 = vadd.f32 1.0, %v2161_v21  ;;  %v2112_v60 = vmul.f32 0.5, %v4237_v25 }
 0x3a7   : > { %v4416_v23 = vmul.f32 %v2511_v17, %v2111_v40  ;;  %v2480_v18 = vsub.f32 0.0, %v2448_v57  ;;  %v2164_v61 = vmul.f32 0.3275911, %v2148_v27  ;;  %2723 = vrot.lane.b32.xlu1 %v4428_v45, %s3553_s12  ;;  %v2445_v25 = vsub.f32 1.0, %v2429_v43 }
 0x3a8   : > { %v2430_v48 = vmul.f32 %v3476_v41, %v2350_v33  ;;  %v2307_v8 = vadd.f32 -0.28449672, %v2291_v5  ;;  %3481 = vrcp.f32 %v2177_v20  ;;  %v4439_v0 = vmul.f32 0.70710677, %v4428_v45 }
 0x3a9   : > { %v2496_v49 = vsel %vm2464_vm15, %v2480_v18, %v2448_v57  ;;  %v2180_v47 = vadd.f32 1.0, %v2164_v61  ;;  %v2369_v10 = vmul.f32 %v2145_v32, %v2145_v32  ;;  %v4443_v14 = vmul.f32 0.70710677, %v4432_v37 }
 0x3aa   : > { %v2512_v13 = vadd.f32 1.0, %v2496_v49  ;;  %v2323_v26 = vmul.f32 %v4378_v9, %v2307_v8  ;;  %v2446_v44 = vsub.f32 1.0, %v2430_v48  ;;  %v2146_v55 = vand.u32 2147483647, %v4439_v0 }
 0x3ab   : > { %3483 = vrcp.f32 %v2180_v47  ;;  %v2109_v56 = vmul.f32 0.5, %v4234_v28  ;;  %v2151_v3 = vand.u32 2147483647, %v4443_v14  ;;  %vm2461_vm0 = vcmp.lt.f32.partialorder %v4252_v31, 0.0 }
 0x3ac   : > { %v4434_v41 = vmul.f32 %v2512_v13, %v2112_v60  ;;  %v2339_v29 = vadd.f32 0.2548296, %v2323_v26  ;;  %v2478_v46 = vsub.f32 0.0, %v2446_v44  ;;  %vm2462_vm1 = vcmp.lt.f32.partialorder %v4273_v19, 0.0 }
 0x3ad   : > { %v3480_v50 = vpop.eup %3479  ;;  %v2162_v4 = vmul.f32 0.3275911, %v2146_v55  ;;  %vm2467_vm2 = vcmp.lt.f32.partialorder %v4311_v35, 0.0  ;;  %v2385_v32 = vsub.f32 0.0, %v2369_v10  ;;  %v2167_v28 = vmul.f32 0.3275911, %v2151_v3 }
 0x3ae   : > { %v2355_v2 = vmul.f32 %v4378_v9, %v2339_v29  ;;  %v2477_v9 = vsub.f32 0.0, %v2445_v25  ;;  %v2372_v11 = vmul.f32 %v2148_v27, %v2148_v27  ;;  %v4461_v51 = vmul.f32 0.70710677, %v4447_v12 }
 0x3af   : > { %v2178_v24 = vadd.f32 1.0, %v2162_v4  ;;  %v2494_v16 = vsel %vm2462_vm1, %v2478_v46, %v2446_v44  ;;  %v2183_v17 = vadd.f32 1.0, %v2167_v28  ;;  %v4465_v19 = vadd.f32 %v4292_v52, %v4204_v62 }
 0x3b0   : > { %v2435_v1 = vmul.f32 %v3480_v50, %v2355_v2  ;;  %v2493_v34 = vsel %vm2461_vm0, %v2477_v9, %v2445_v25  ;;  %v2149_v33 = vand.u32 2147483647, %v4461_v51  ;;  %v2115_v5 = vmul.f32 0.5, %v4303_v59 }
 0x3b1   : > { %3485 = vrcp.f32 %v2178_v24  ;;  %v2409_v18 = vmul.f32 1.442695, %v2385_v32  ;;  %v2510_v48 = vadd.f32 1.0, %v2494_v16  ;;  %v2509_v49 = vadd.f32 1.0, %v2493_v34 }
 0x3b2   : > { %v4456_v6 = vpop.eup %3481  ;;  %v2451_v54 = vsub.f32 1.0, %v2435_v1  ;;  %3487 = vrcp.f32 %v2183_v17  ;;  %v2165_v43 = vmul.f32 0.3275911, %v2149_v33  ;;  %v2110_v31 = vmul.f32 0.5, %v4245_v39 }
 0x3b3   : > { %v2225_v40 = vmul.f32 1.0614054, %v4456_v6  ;;  %v2388_v27 = vsub.f32 0.0, %v2372_v11  ;;  %v4478_v60 = vmul.f32 0.70710677, %v4465_v19  ;;  %v4486_v61 = vadd.f32 %v4204_v62, %v4296_v53 }
 0x3b4   : > { %v2483_v21 = vsub.f32 0.0, %v2451_v54  ;;  %v2181_v26 = vadd.f32 1.0, %v2165_v43  ;;  %3489 = vpow2.f32 %v2409_v18  ;;  %v2370_v29 = vmul.f32 %v2146_v55, %v2146_v55 }
 0x3b5   : > { %v2241_v57 = vadd.f32 -1.4531521, %v2225_v40  ;;  %v4480_v13 = vpop.eup %3483  ;;  %v2152_v39 = vand.u32 2147483647, %v4478_v60  ;;  %v2526_v25 = vmul.f32 %v2510_v48, %v2110_v31  ;;  %v4492_v2 = vmul.f32 0.70710677, %v4486_v61  ;;  %2731 = vrot.lane.b32.xlu1 %v4486_v61, %s3553_s12 }
 0x3b6   : > { %v2499_v20 = vsel %vm2467_vm2, %v2483_v21, %v2451_v54  ;;  %v2228_v44 = vmul.f32 1.0614054, %v4480_v13  ;;  %3491 = vrcp.f32 %v2181_v26  ;;  %v2525_v10 = vmul.f32 %v2509_v49, %v2109_v56 }
 0x3b7   : > { %v2515_v52 = vadd.f32 1.0, %v2499_v20  ;;  %v2257_v8 = vmul.f32 %v4456_v6, %v2241_v57  ;;  %v2375_v62 = vmul.f32 %v2151_v3, %v2151_v3  ;;  %v2168_v53 = vmul.f32 0.3275911, %v2152_v39 }
 0x3b8   : > { %v2244_v50 = vadd.f32 -1.4531521, %v2228_v44  ;;  %v2415_v1 = vmul.f32 1.442695, %v2388_v27  ;;  %v2150_v55 = vand.u32 2147483647, %v4492_v2  ;;  %v2537_v9 = vpack.c.bf16 %v4405_v36, %v4385_v30 }
 0x3b9   : > { %v4482_v59 = vmul.f32 %v2515_v52, %v2115_v5  ;;  %v2273_v35 = vadd.f32 1.4214138, %v2257_v8  ;;  %v2386_v54 = vsub.f32 0.0, %v2370_v29  ;;  %v2184_v32 = vadd.f32 1.0, %v2168_v53  ;;  %2735 = vrot.lane.b32.xlu1 %v4465_v19, %s3553_s12 }
 0x3ba   : > { %v2260_v4 = vmul.f32 %v4480_v13, %v2244_v50  ;;  %v2373_v11 = vmul.f32 %v2149_v33, %v2149_v33  ;;  %v2166_v56 = vmul.f32 0.3275911, %v2150_v55  ;;  %3248 = vmatprep.mubr.msk.bf16.mxu1 %vm1604_vm7, %v2537_v9  ;;  %v2539_v3 = vpack.c.bf16 %v2526_v25, %v2525_v10 }
 0x3bb   : > { %v2289_v47 = vmul.f32 %v4456_v6, %v2273_v35  ;;  %v4500_v28 = vpop.eup %3485  ;;  %v2391_v36 = vsub.f32 0.0, %v2375_v62  ;;  %3493 = vrcp.f32 %v2184_v32  ;;  %3249 = vmatmul.mubr.msk.bf16.vlgmr.msra.gmra.mrb[16].mxu1 %vm1604_vm7, %v2538_v15  ;;  %v2411_v5 = vmul.f32 1.442695, %v2386_v54 }
 0x3bc   : > { %v4506_v24 = vpop.eup %3487  ;;  %v2276_v16 = vadd.f32 1.4214138, %v2260_v4  ;;  %v2226_v30 = vmul.f32 1.0614054, %v4500_v28  ;;  %3495 = vpow2.f32 %v2415_v1  ;;  %v2182_v34 = vadd.f32 1.0, %v2166_v56  ;;  %3252 = vmatprep.mubr.msk.bf16.mxu1 %vm1604_vm7, %v2539_v3 }
 0x3bd   : > { %v2305_v46 = vadd.f32 -0.28449672, %v2289_v47  ;;  %v2231_v17 = vmul.f32 1.0614054, %v4506_v24  ;;  %v2540_v20 = vpack.c.bf16 %v4434_v41, %v4416_v23  ;;  %v2389_v58 = vsub.f32 0.0, %v2373_v11 }
 0x3be   : > { %v2292_v57 = vmul.f32 %v4480_v13, %v2276_v16  ;;  %v2242_v33 = vadd.f32 -1.4531521, %v2226_v30  ;;  %3497 = vrcp.f32 %v2182_v34  ;;  %v3490_v22 = vpop.eup %3489  ;;  %v2421_v8 = vmul.f32 1.442695, %v2391_v36 }
 0x3bf   : > { %v2321_v40 = vmul.f32 %v4456_v6, %v2305_v46  ;;  %v2247_v48 = vadd.f32 -1.4531521, %v2231_v17  ;;  %v2376_v27 = vmul.f32 %v2152_v39, %v2152_v39  ;;  %v2113_v35 = vmul.f32 0.5, %v4316_v63 }
 0x3c0   : > { %v2308_v15 = vadd.f32 -0.28449672, %v2292_v57  ;;  %v2258_v52 = vmul.f32 %v4500_v28, %v2242_v33  ;;  %v4520_v43 = vpop.eup %3491  ;;  %3499 = vpow2.f32 %v2411_v5  ;;  %v2417_v29 = vmul.f32 1.442695, %v2389_v58 }
 0x3c1   : > { %v2337_v21 = vadd.f32 0.2548296, %v2321_v40  ;;  %v2263_v31 = vmul.f32 %v4506_v24, %v2247_v48  ;;  %3501 = vpow2.f32 %v2421_v8  ;;  %v2392_v63 = vsub.f32 0.0, %v2376_v27 }
 0x3c2   : > { %v2324_v23 = vmul.f32 %v4480_v13, %v2308_v15  ;;  %v2274_v41 = vadd.f32 1.4214138, %v2258_v52  ;;  %v2374_v62 = vmul.f32 %v2150_v55, %v2150_v55  ;;  %vm2465_vm3 = vcmp.lt.f32.partialorder %v4397_v42, 0.0 }
 0x3c3   : > { %v2353_v18 = vmul.f32 %v4456_v6, %v2337_v21  ;;  %v2229_v6 = vmul.f32 1.0614054, %v4520_v43  ;;  %v2279_v44 = vadd.f32 1.4214138, %v2263_v31  ;;  %3253 = vmatmul.mubr.msk.bf16.gmra.mrb[20].mxu1 %vm1604_vm7, %v2540_v20  ;;  %3503 = vpow2.f32 %v2417_v29 }
 0x3c4   : > { %v2340_v25 = vadd.f32 0.2548296, %v2324_v23  ;;  %v2290_v47 = vmul.f32 %v4500_v28, %v2274_v41  ;;  %v2390_v36 = vsub.f32 0.0, %v2374_v62  ;;  %v2116_v33 = vmul.f32 0.5, %v4320_v7 }
 0x3c5   : > { %v2433_v49 = vmul.f32 %v3490_v22, %v2353_v18  ;;  %v2245_v10 = vadd.f32 -1.4531521, %v2229_v6  ;;  %v2295_v39 = vmul.f32 %v4506_v24, %v2279_v44  ;;  %v4529_v53 = vpop.eup %3493  ;;  %vm2468_vm4 = vcmp.lt.f32.partialorder %v4419_v38, 0.0 }
 0x3c6   : > { %v2356_v46 = vmul.f32 %v4480_v13, %v2340_v25  ;;  %v2306_v1 = vadd.f32 -0.28449672, %v2290_v47  ;;  %v3496_v4 = vpop.eup %3495  ;;  %v2232_v40 = vmul.f32 1.0614054, %v4529_v53  ;;  %v2423_v13 = vmul.f32 1.442695, %v2392_v63 }
 0x3c7   : > { %v2449_v26 = vsub.f32 1.0, %v2433_v49  ;;  %v2261_v9 = vmul.f32 %v4520_v43, %v2245_v10  ;;  %v2311_v32 = vadd.f32 -0.28449672, %v2295_v39  ;;  %v2419_v23 = vmul.f32 1.442695, %v2390_v36 }
 0x3c8   : > { %v2436_v56 = vmul.f32 %v3496_v4, %v2356_v46  ;;  %v2322_v3 = vmul.f32 %v4500_v28, %v2306_v1  ;;  %v4536_v16 = vpop.eup %3497  ;;  %v2248_v30 = vadd.f32 -1.4531521, %v2232_v40  ;;  %3505 = vpow2.f32 %v2423_v13 }
 0x3c9   : > { %v2481_v50 = vsub.f32 0.0, %v2449_v26  ;;  %v2277_v55 = vadd.f32 1.4214138, %v2261_v9  ;;  %v2327_v42 = vmul.f32 %v4506_v24, %v2311_v32  ;;  %v2230_v18 = vmul.f32 1.0614054, %v4536_v16 }
 0x3ca   : > { %v2452_v17 = vsub.f32 1.0, %v2436_v56  ;;  %v2338_v34 = vadd.f32 0.2548296, %v2322_v3  ;;  %v2264_v20 = vmul.f32 %v4529_v53, %v2248_v30  ;;  %v3500_v15 = vpop.eup %3499  ;;  %3507 = vpow2.f32 %v2419_v23 }
 0x3cb   : > { %v2497_v54 = vsel %vm2465_vm3, %v2481_v50, %v2449_v26  ;;  %v2293_v57 = vmul.f32 %v4520_v43, %v2277_v55  ;;  %v2343_v5 = vadd.f32 0.2548296, %v2327_v42  ;;  %v2246_v49 = vadd.f32 -1.4531521, %v2230_v18  ;;  %v3502_v31 = vpop.eup %3501 }
 0x3cc   : > { %v2513_v11 = vadd.f32 1.0, %v2497_v54  ;;  %v2484_v48 = vsub.f32 0.0, %v2452_v17  ;;  %v2354_v58 = vmul.f32 %v4500_v28, %v2338_v34  ;;  %v2280_v8 = vadd.f32 1.4214138, %v2264_v20 }
 0x3cd   : > { %v2309_v22 = vadd.f32 -0.28449672, %v2293_v57  ;;  %v2359_v52 = vmul.f32 %v4506_v24, %v2343_v5  ;;  %v2262_v26 = vmul.f32 %v4536_v16, %v2246_v49  ;;  %v3504_v29 = vpop.eup %3503  ;;  %vm2466_vm6 = vcmp.lt.f32.partialorder %v4439_v0, 0.0 }
 0x3ce   : > { %v2529_v21 = vmul.f32 %v2513_v11, %v2113_v35  ;;  %v2500_v27 = vsel %vm2468_vm4, %v2484_v48, %v2452_v17  ;;  %v2434_v7 = vmul.f32 %v3500_v15, %v2354_v58  ;;  %v2296_v38 = vmul.f32 %v4529_v53, %v2280_v8 }
 0x3cf   : > { %v2325_v35 = vmul.f32 %v4520_v43, %v2309_v22  ;;  %v2516_v41 = vadd.f32 1.0, %v2500_v27  ;;  %v2439_v6 = vmul.f32 %v3502_v31, %v2359_v52  ;;  %v2278_v47 = vadd.f32 1.4214138, %v2262_v26 }
 0x3d0   : > { %v2450_v28 = vsub.f32 1.0, %v2434_v7  ;;  %v2312_v24 = vadd.f32 -0.28449672, %v2296_v38  ;;  %v2114_v4 = vmul.f32 0.5, %v4428_v45  ;;  %vm2471_vm8 = vcmp.lt.f32.partialorder %v4443_v14, 0.0 }
 0x3d1   : > { %v2341_v44 = vadd.f32 0.2548296, %v2325_v35  ;;  %v2532_v25 = vmul.f32 %v2516_v41, %v2116_v33  ;;  %v2455_v50 = vsub.f32 1.0, %v2439_v6  ;;  %v2294_v62 = vmul.f32 %v4536_v16, %v2278_v47 }
 0x3d2   : > { %v2482_v10 = vsub.f32 0.0, %v2450_v28  ;;  %v2328_v63 = vmul.f32 %v4529_v53, %v2312_v24  ;;  %v3506_v56 = vpop.eup %3505  ;;  %vm2469_vm9 = vcmp.lt.f32.partialorder %v4461_v51, 0.0  ;;  %vm2472_vm10 = vcmp.lt.f32.partialorder %v4478_v60, 0.0 }
 0x3d3   : > { %v2357_v39 = vmul.f32 %v4520_v43, %v2341_v44  ;;  %v2542_v46 = vpack.c.bf16 %v2532_v25, %v4482_v59  ;;  %v2310_v40 = vadd.f32 -0.28449672, %v2294_v62  ;;  %v2487_v11 = vsub.f32 0.0, %v2455_v50 }
 0x3d4   : > { %v2498_v1 = vsel %vm2466_vm6, %v2482_v10, %v2450_v28  ;;  %v2344_v32 = vadd.f32 0.2548296, %v2328_v63  ;;  %v3508_v34 = vpop.eup %3507  ;;  %v2119_v20 = vmul.f32 0.5, %v4432_v37  ;;  %v2120_v18 = vmul.f32 0.5, %v4465_v19 }
 0x3d5   : > { %v2437_v9 = vmul.f32 %v3504_v29, %v2357_v39  ;;  %v2514_v54 = vadd.f32 1.0, %v2498_v1  ;;  %v2326_v0 = vmul.f32 %v4536_v16, %v2310_v40  ;;  %v2503_v59 = vsel %vm2471_vm8, %v2487_v11, %v2455_v50 }
 0x3d6   : > { %v2360_v55 = vmul.f32 %v4529_v53, %v2344_v32  ;;  %v2519_v53 = vadd.f32 1.0, %v2503_v59  ;;  %vm2470_vm11 = vcmp.lt.f32.partialorder %v4492_v2, 0.0  ;;  %v2117_v51 = vmul.f32 0.5, %v4447_v12  ;;  %v4575_v12 = vld [vmem:[%s4667_s6] ss:$0 sm:$0xff] }
 0x3d7   : > { %v2530_v3 = vmul.f32 %v2514_v54, %v2114_v4  ;;  %v2453_v43 = vsub.f32 1.0, %v2437_v9  ;;  %v2342_v30 = vadd.f32 0.2548296, %v2326_v0  ;;  %v2118_v60 = vmul.f32 0.5, %v4486_v61 }
 0x3d8   : > { %v2440_v42 = vmul.f32 %v3506_v56, %v2360_v55  ;;  %v2535_v58 = vmul.f32 %v2519_v53, %v2119_v20 }
 0x3d9   : > { %v2541_v13 = vpack.c.bf16 %v2530_v3, %v2529_v21  ;;  %v2485_v36 = vsub.f32 0.0, %v2453_v43  ;;  %v2358_v45 = vmul.f32 %v4536_v16, %v2342_v30 }
 0x3da   : > { %v2456_v17 = vsub.f32 1.0, %v2440_v42 }
 0x3db   : > { %3256 = vmatprep.mubr.msk.bf16.mxu1 %vm1604_vm7, %v2541_v13  ;;  %v2438_v33 = vmul.f32 %v3508_v34, %v2358_v45  ;;  %v2501_v21 = vsel %vm2469_vm9, %v2485_v36, %v2453_v43 }
 0x3dc   : > { %3257 = vmatmul.mubr.msk.bf16.gmra.mrb[24].mxu1 %vm1604_vm7, %v2542_v46  ;;  %v2488_v57 = vsub.f32 0.0, %v2456_v17  ;;  %v2517_v22 = vadd.f32 1.0, %v2501_v21 }
 0x3dd   : > { %v2454_v14 = vsub.f32 1.0, %v2438_v33 }
 0x3de   : > { %v2504_v5 = vsel %vm2472_vm10, %v2488_v57, %v2456_v17  ;;  %v2533_v31 = vmul.f32 %v2517_v22, %v2117_v51 }
 0x3df   : > { %v2520_v16 = vadd.f32 1.0, %v2504_v5  ;;  %v2486_v48 = vsub.f32 0.0, %v2454_v14 }
 0x3e1   : > { %v2536_v15 = vmul.f32 %v2520_v16, %v2120_v18  ;;  %v2502_v52 = vsel %vm2470_vm11, %v2486_v48, %v2454_v14  ;;  %v2710_v19 = vpop.permute.xlu0 %2709 }
 0x3e2   : > { %v2518_v8 = vadd.f32 1.0, %v2502_v52 }
 0x3e3   : > { %v2544_v49 = vpack.c.bf16 %v2536_v15, %v2535_v58  ;;  %v2712_v2 = vpop.permute.xlu1 %2711 }
 0x3e4   : > { %v2534_v37 = vmul.f32 %v2518_v8, %v2118_v60 }
 0x3e5   : > { %v2706_v61 = vpop.permute.xlu0 %2705 }
 0x3e6   : > { %v2543_v27 = vpack.c.bf16 %v2534_v37, %v2533_v31 }
 0x3e7   : > { %v2708_v35 = vpop.permute.xlu1 %2707 }
 0x3e8   : > { %3260 = vmatprep.mubr.msk.bf16.mxu1 %vm1604_vm7, %v2543_v27 }
 0x3e9   : > { %3261 = vmatmul.mubr.msk.bf16.gmra.mrb[28].mxu1 %vm1604_vm7, %v2544_v49  ;;  %vm2769_vm7 = vcmask 130048   ;;  %v2718_v24 = vpop.permute.xlu0 %2717 }
 0x3eb   : > { %v2720_v50 = vpop.permute.xlu1 %2719 }
 0x3ed   : > { %v2714_v9 = vpop.permute.xlu0 %2713 }
 0x3ef   : > { %v2716_v56 = vpop.permute.xlu1 %2715 }
 0x3f1   : > { %v2726_v55 = vpop.permute.xlu0 %2725 }
 0x3f7   : > { %v2722_v17 = vpop.permute.xlu0 %2721 }
 0x3f8   : > { %v2728_v0 = vpop.permute.xlu1 %2727 }
 0x405   : > { %v2730_v20 = vpop.permute.xlu0 %2729 }
 0x409   : > { %v2734_v22 = vpop.permute.xlu0 %2733 }
 0x419   : > { %v2724_v21 = vpop.permute.xlu1 %2723 }
 0x427   : > { %v2732_v18 = vpop.permute.xlu1 %2731 }
 0x42b   : > { %v2736_v49 = vpop.permute.xlu1 %2735 }
 0x48e   : > { %v3250_v7 = vpop.f32.mrb[16].mxu1 }
 0x48f   : > { %v2635_v23 = vadd.f32 %v3250_v7, %v4575_v12  ;;  %v2626_v41 = vpop.f32.mrb[17].mxu1 }
 0x490   : > { %v2627_v6 = vadd.f32 %v4575_v12, %v2626_v41  ;;  %v3251_v38 = vpop.f32.mrb[18].mxu1 }
 0x491   : > { %v2755_v26 = vsel %vm742_vm5, %v2635_v23, %v2710_v19  ;;  %v2638_v28 = vadd.f32 %v3251_v38, %v4575_v12  ;;  %v2629_v44 = vpop.f32.mrb[19].mxu1 }
 0x492   : > { %2772 = vst.msk [vmem:[%s4580_s24 + $0x10] sm:$0xff] %vm2769_vm7, %v2755_v26  ;;  %v2753_v29 = vsel %vm742_vm5, %v2627_v6, %v2706_v61  ;;  %v2630_v25 = vadd.f32 %v4575_v12, %v2629_v44 }
 0x493   : > { %2770 = vst.msk [vmem:[%s4580_s24] sm:$0xff] %vm2769_vm7, %v2753_v29  ;;  %v2756_v47 = vsel %vm742_vm5, %v2638_v28, %v2712_v2 }
 0x494   : > { %2773 = vst.msk [vmem:[%s4580_s24 + $0x18] sm:$0xff] %vm2769_vm7, %v2756_v47  ;;  %v2754_v10 = vsel %vm742_vm5, %v2630_v25, %v2708_v35 }
 0x495   : > { %2771 = vst.msk [vmem:[%s4580_s24 + $0x8] sm:$0xff] %vm2769_vm7, %v2754_v10 }
 0x496   : > { %v3254_v39 = vpop.f32.mrb[20].mxu1 }
 0x497   : > { %v2651_v63 = vadd.f32 %v3254_v39, %v4575_v12  ;;  %v2642_v62 = vpop.f32.mrb[21].mxu1 }
 0x498   : > { %v2643_v46 = vadd.f32 %v4575_v12, %v2642_v62  ;;  %v3255_v1 = vpop.f32.mrb[22].mxu1 }
 0x499   : > { %v2759_v4 = vsel %vm742_vm5, %v2651_v63, %v2718_v24  ;;  %v2654_v54 = vadd.f32 %v3255_v1, %v4575_v12  ;;  %v2645_v32 = vpop.f32.mrb[23].mxu1 }
 0x49a   : > { %2776 = vst.msk [vmem:[%s4580_s24 + $0x30] sm:$0xff] %vm2769_vm7, %v2759_v4  ;;  %v2757_v40 = vsel %vm742_vm5, %v2643_v46, %v2714_v9  ;;  %v2646_v11 = vadd.f32 %v4575_v12, %v2645_v32 }
 0x49b   : > { %2774 = vst.msk [vmem:[%s4580_s24 + $0x20] sm:$0xff] %vm2769_vm7, %v2757_v40  ;;  %v2760_v3 = vsel %vm742_vm5, %v2654_v54, %v2720_v50 }
 0x49c   : > { %2777 = vst.msk [vmem:[%s4580_s24 + $0x38] sm:$0xff] %vm2769_vm7, %v2760_v3  ;;  %v2758_v43 = vsel %vm742_vm5, %v2646_v11, %v2716_v56 }
 0x49d   : > { %2775 = vst.msk [vmem:[%s4580_s24 + $0x28] sm:$0xff] %vm2769_vm7, %v2758_v43 }
 0x4af   : > { %v3258_v42 = vpop.f32.mrb[24].mxu1 }
 0x4b0   : > { %v2667_v30 = vadd.f32 %v3258_v42, %v4575_v12  ;;  %v2658_v13 = vpop.f32.mrb[25].mxu1 }
 0x4b1   : > { %v2659_v59 = vadd.f32 %v4575_v12, %v2658_v13  ;;  %v3259_v36 = vpop.f32.mrb[26].mxu1 }
 0x4b2   : > { %v2763_v45 = vsel %vm742_vm5, %v2667_v30, %v2726_v55  ;;  %v2670_v34 = vadd.f32 %v3259_v36, %v4575_v12  ;;  %v2661_v57 = vpop.f32.mrb[27].mxu1 }
 0x4b3   : > { %2780 = vst.msk [vmem:[%s4580_s24 + $0x50] sm:$0xff] %vm2769_vm7, %v2763_v45  ;;  %v2761_v33 = vsel %vm742_vm5, %v2659_v59, %v2722_v17  ;;  %v2662_v53 = vadd.f32 %v4575_v12, %v2661_v57 }
 0x4b4   : > { %2778 = vst.msk [vmem:[%s4580_s24 + $0x40] sm:$0xff] %vm2769_vm7, %v2761_v33  ;;  %v2764_v5 = vsel %vm742_vm5, %v2670_v34, %v2728_v0 }
 0x4b5   : > { %2781 = vst.msk [vmem:[%s4580_s24 + $0x58] sm:$0xff] %vm2769_vm7, %v2764_v5  ;;  %v2762_v14 = vsel %vm742_vm5, %v2662_v53, %v2724_v21 }
 0x4b6   : > { %2779 = vst.msk [vmem:[%s4580_s24 + $0x48] sm:$0xff] %vm2769_vm7, %v2762_v14 }
 0x4bc   : > { %v3262_v16 = vpop.f32.mrb[28].mxu1 }
 0x4bd   : > { %v2683_v48 = vadd.f32 %v3262_v16, %v4575_v12  ;;  %v2674_v58 = vpop.f32.mrb[29].mxu1 }
 0x4be   : > { %v2675_v15 = vadd.f32 %v4575_v12, %v2674_v58  ;;  %v3263_v52 = vpop.f32.mrb[30].mxu1 }
 0x4bf   : > { %v2767_v51 = vsel %vm742_vm5, %v2683_v48, %v2734_v22  ;;  %v2686_v60 = vadd.f32 %v3263_v52, %v4575_v12  ;;  %v2677_v8 = vpop.f32.mrb[31].mxu1 }
 0x4c0   : > { %2784 = vst.msk [vmem:[%s4580_s24 + $0x70] sm:$0xff] %vm2769_vm7, %v2767_v51  ;;  %v2765_v31 = vsel %vm742_vm5, %v2675_v15, %v2730_v20  ;;  %v2678_v37 = vadd.f32 %v4575_v12, %v2677_v8 }
 0x4c1   : > { %2782 = vst.msk [vmem:[%s4580_s24 + $0x60] sm:$0xff] %vm2769_vm7, %v2765_v31  ;;  %v2768_v27 = vsel %vm742_vm5, %v2686_v60, %v2736_v49 }
 0x4c2   : > { %2785 = vst.msk [vmem:[%s4580_s24 + $0x78] sm:$0xff] %vm2769_vm7, %v2768_v27  ;;  %v2766_v19 = vsel %vm742_vm5, %v2678_v37, %v2732_v18 }
 0x4c3   : > { %2783 = vst.msk [vmem:[%s4580_s24 + $0x68] sm:$0xff] %vm2769_vm7, %v2766_v19 }
 0x4c4 PF: > { %s17_s28 = sadd.s32 1, %s3547_s28   ;;  %s4669_s24 = smov %s3539_s26 }
 0x4c5   : > { %p14_p10 = scmp.ge.s32.totalorder %s17_s28, 6   ;;  %s4670_s25 = smov %s3543_s27 }
 0x4c6   : > { %s4671_s26 = smov %s4674_s29  ;;  %s4672_s27 = smov %s4678_s30 }
 0x4c7   :  { %16 = sbr.rel (!%p14_p10) target bundleno = 3 (0x3), region = 78 }

</bundles_post_ra>
